<compile_context>
chip_gen: v7x
topology: tpu7x:2x2x1
jax: 0.10.0
libtpu: 0.0.40
codegen_flags: <defaults>
</compile_context>

<pallas_src>
import functools

import jax
import jax.numpy as jnp
from jax.experimental import pallas as pl
from jax.experimental.pallas import tpu as pltpu

LANE = 128  # pad feature / hidden / class dims to the 128-lane vreg width


def _sage_layer_kernel(a_ref, xn_ref, xs_ref, wl_ref, wr_ref, b_ref,
                       out_ref, acc_ref, *, apply_relu, apply_log_softmax):
    """One tiled SAGEConv(mean) layer.

    Grid: (row tiles, neighbor-reduction tiles).  acc_ref accumulates
    A_tile @ X_tile (the mean aggregation) in f32; weight matmuls, bias and
    activation run once in the k == last epilogue (lean inner loop).
    """
    k = pl.program_id(1)

    @pl.when(k == 0)
    def _():
        acc_ref[...] = jnp.zeros_like(acc_ref)

    # bf16 x bf16 -> f32 accumulate on the MXU (dominant O(N^2 * F) work).
    acc_ref[...] += jnp.dot(a_ref[...], xn_ref[...],
                            preferred_element_type=jnp.float32)

    @pl.when(k == pl.num_programs(1) - 1)
    def _():
        agg = acc_ref[...]                                          # [TM, Fin] f32
        z = (jnp.dot(agg, wl_ref[...], preferred_element_type=jnp.float32)
             + jnp.dot(xs_ref[...].astype(jnp.float32), wr_ref[...],
                       preferred_element_type=jnp.float32)
             + b_ref[...])                                          # [TM, Fout]
        if apply_relu:
            z = jnp.maximum(z, 0.0)                                 # dropout p=0 -> no-op
        if apply_log_softmax:
            z = z - jnp.max(z, axis=-1, keepdims=True)
            z = z - jnp.log(jnp.sum(jnp.exp(z), axis=-1, keepdims=True))
        out_ref[...] = z.astype(out_ref.dtype)


def _sage_layer(a_bf16, x_bf16, wl, wr, b, *, out_dtype, apply_relu,
                apply_log_softmax, tm, tk):
    """One pallas_call for one SAGEConv layer on padded, lane-dense arrays."""
    n = a_bf16.shape[0]
    fin = x_bf16.shape[1]
    fout = wl.shape[1]
    grid = (n // tm, n // tk)

    kern = functools.partial(_sage_layer_kernel, apply_relu=apply_relu,
                             apply_log_softmax=apply_log_softmax)

    out_bytes = 2 if out_dtype == jnp.bfloat16 else 4
    cost = pl.CostEstimate(
        flops=2 * n * n * fin + 4 * n * fin * fout,
        transcendentals=(n * fout if apply_log_softmax else 0),
        bytes_accessed=(2 * n * n                        # A (bf16), read once
                        + (n // tm) * n * fin * 2        # neighbor features per row tile
                        + n * fin * 2                    # self features
                        + 2 * 4 * fin * fout + 4 * fout  # weights + bias (f32)
                        + n * fout * out_bytes))         # output

    return pl.pallas_call(
        kern,
        out_shape=jax.ShapeDtypeStruct((n, fout), out_dtype),
        grid=grid,
        in_specs=[
            pl.BlockSpec((tm, tk), lambda i, k: (i, k)),      # A tile (streamed)
            pl.BlockSpec((tk, fin), lambda i, k: (k, 0)),     # neighbor features
            pl.BlockSpec((tm, fin), lambda i, k: (i, 0)),     # self features (resident over k)
            pl.BlockSpec((fin, fout), lambda i, k: (0, 0)),   # W_l (resident)
            pl.BlockSpec((fin, fout), lambda i, k: (0, 0)),   # W_r (resident)
            pl.BlockSpec((1, fout), lambda i, k: (0, 0)),     # bias (resident)
        ],
        out_specs=pl.BlockSpec((tm, fout), lambda i, k: (i, 0)),
        scratch_shapes=[pltpu.VMEM((tm, fin), jnp.float32)],  # aggregation accumulator
        compiler_params=pltpu.CompilerParams(
            dimension_semantics=("parallel", "arbitrary"),
            vmem_limit_bytes=64 * 1024 * 1024),
        cost_estimate=cost,
    )(a_bf16, x_bf16, x_bf16, wl, wr, b)


def graphsaint_forward(x, edge_index, params, *, tile=256):
    """x: [N, Fin] f32, edge_index: [2, E] int32 (row 0 = src, row 1 = dst)."""
    n, fin = x.shape
    w1l, w1r, b1, w2l, w2r, b2 = params
    hid = w1l.shape[1]
    out_c = w2l.shape[1]

    # ---- dense row-normalized adjacency == PyG scatter-mean over the edge list ----
    # TODO(synk): for large/sparse subgraphs replace this dense N x N build with a
    # CSR / edge-list gather path (PrefetchScalarGridSpec + manual make_async_copy).
    src, dst = edge_index[0], edge_index[1]
    counts = jnp.zeros((n, n), jnp.float32).at[dst, src].add(1.0)
    deg = jnp.sum(counts, axis=1, keepdims=True)
    a = counts / jnp.maximum(deg, 1.0)

    # ---- pad: rows to a tile multiple, feature/hidden/class dims to 128 lanes ----
    tm = tile
    tk = tile
    n_pad = ((n + tile - 1) // tile) * tile
    if n_pad < tile:
        n_pad = tile
    f_pad = ((max(fin, 1) + LANE - 1) // LANE) * LANE
    h_pad = ((max(hid, 1) + LANE - 1) // LANE) * LANE
    c_pad = ((max(out_c, 1) + LANE - 1) // LANE) * LANE

    a_p = jnp.pad(a, ((0, n_pad - n), (0, n_pad - n))).astype(jnp.bfloat16)
    x_p = jnp.pad(x, ((0, n_pad - n), (0, f_pad - fin))).astype(jnp.bfloat16)

    w1l_p = jnp.pad(w1l, ((0, f_pad - fin), (0, h_pad - hid)))
    w1r_p = jnp.pad(w1r, ((0, f_pad - fin), (0, h_pad - hid)))
    b1_p = jnp.pad(b1, ((0, 0), (0, h_pad - hid)))
    w2l_p = jnp.pad(w2l, ((0, h_pad - hid), (0, c_pad - out_c)))
    w2r_p = jnp.pad(w2r, ((0, h_pad - hid), (0, c_pad - out_c)))
    # padded class columns get a huge negative bias so they vanish in log_softmax
    b2_p = jnp.pad(b2, ((0, 0), (0, c_pad - out_c)), constant_values=-1e30)

    # Layer 1: mean-aggregate + linear + bias + ReLU, h kept in bf16 (lane-dense).
    h = _sage_layer(a_p, x_p, w1l_p, w1r_p, b1_p, out_dtype=jnp.bfloat16,
                    apply_relu=True, apply_log_softmax=False, tm=tm, tk=tk)
    # Layer 2: mean-aggregate + linear + bias + log_softmax (f32, lane-dense).
    z = _sage_layer(a_p, h, w2l_p, w2r_p, b2_p, out_dtype=jnp.float32,
                    apply_relu=False, apply_log_softmax=True, tm=tm, tk=tk)

    return z[:n, :out_c]


def init_params(key, in_channels, hidden_channels, out_channels):
    ks = jax.random.split(key, 6)
    s = 0.1
    w1l = s * jax.random.normal(ks[0], (in_channels, hidden_channels), jnp.float32)
    w1r = s * jax.random.normal(ks[1], (in_channels, hidden_channels), jnp.float32)
    b1 = s * jax.random.normal(ks[2], (1, hidden_channels), jnp.float32)
    w2l = s * jax.random.normal(ks[3], (hidden_channels, out_channels), jnp.float32)
    w2r = s * jax.random.normal(ks[4], (hidden_channels, out_channels), jnp.float32)
    b2 = s * jax.random.normal(ks[5], (1, out_channels), jnp.float32)
    return (w1l, w1r, b1, w2l, w2r, b2)


def _reference(x, edge_index, params):
    """Pure-JAX f32 reference."""
    n = x.shape[0]
    src, dst = edge_index[0], edge_index[1]
    counts = jnp.zeros((n, n), jnp.float32).at[dst, src].add(1.0)
    deg = jnp.sum(counts, axis=1, keepdims=True)
    a = counts / jnp.maximum(deg, 1.0)
    w1l, w1r, b1, w2l, w2r, b2 = params
    h = jnp.maximum(a @ x @ w1l + x @ w1r + b1, 0.0)
    z = a @ h @ w2l + h @ w2r + b2
    return jax.nn.log_softmax(z, axis=-1)


if __name__ == "__main__":
    # Small synthetic graph consistent with the module's forward().
    # N=512 with 256x256 tiles -> a real 2x2 (row x reduction) grid per layer.
    N, FIN, HID, OUT, E = 512, 64, 64, 16, 2048

    key = jax.random.PRNGKey(0)
    kx, ke1, ke2, kp = jax.random.split(key, 4)

    x = jax.random.normal(kx, (N, FIN), jnp.float32)
    src = jax.random.randint(ke1, (E,), 0, N, jnp.int32)
    dst = jax.random.randint(ke2, (E,), 0, N, jnp.int32)
    edge_index = jnp.stack([src, dst], axis=0)          # [2, E]

    params = init_params(kp, FIN, HID, OUT)

    out = graphsaint_forward(x, edge_index, params)
    out = jax.block_until_ready(out)

    ref = _reference(x, edge_index, params)
    assert out.shape == (N, OUT)
    # bf16 A / x / h on the MXU (f32 accumulation) -> small deviations vs f32 ref.
    assert jnp.allclose(out, ref, atol=5e-2, rtol=5e-2), "mismatch vs reference"

    print("KERNEL_OK")
</pallas_src>

<mosaic_0001>
module attributes {stable_mosaic.version = 11 : i64} {
  func.func @_sage_layer_kernel(%arg0: i32, %arg1: i32, %arg2: memref<256x256xbf16, #tpu.memory_space<vmem>>, %arg3: memref<256x128xbf16, #tpu.memory_space<vmem>>, %arg4: memref<256x128xbf16, #tpu.memory_space<vmem>>, %arg5: memref<128x128xf32, #tpu.memory_space<vmem>>, %arg6: memref<128x128xf32, #tpu.memory_space<vmem>>, %arg7: memref<1x128xf32, #tpu.memory_space<vmem>>, %arg8: memref<256x128xbf16, #tpu.memory_space<vmem>>, %arg9: memref<256x128xf32, #tpu.memory_space<vmem>>) attributes {dimension_semantics = [#tpu.dimension_semantics<parallel>, #tpu.dimension_semantics<arbitrary>], iteration_bounds = array<i64: 2, 2>, scalar_prefetch = 0 : i64, scratch_operands = 1 : i64, tpu.core_type = #tpu.core_type<tc>, window_params = [{transform_indices = @transform_0, window_bounds = array<i64: 256, 256>}, {transform_indices = @transform_1, window_bounds = array<i64: 256, 128>}, {transform_indices = @transform_2, window_bounds = array<i64: 256, 128>}, {pipeline_mode = #tpu.pipeline_mode<synchronous>, transform_indices = @transform_3, window_bounds = array<i64: 128, 128>}, {pipeline_mode = #tpu.pipeline_mode<synchronous>, transform_indices = @transform_4, window_bounds = array<i64: 128, 128>}, {pipeline_mode = #tpu.pipeline_mode<synchronous>, transform_indices = @transform_5, window_bounds = array<i64: 1, 128>}, {transform_indices = @transform_6, window_bounds = array<i64: 256, 128>}]} {
    %c0_i32 = arith.constant 0 : i32
    %0 = arith.cmpi eq, %arg1, %c0_i32 : i32
    %1 = arith.extui %0 : i1 to i32
    %c0_i32_0 = arith.constant 0 : i32
    %2 = arith.cmpi ne, %1, %c0_i32_0 : i32
    scf.if %2 {
      %cst_9 = arith.constant 0.000000e+00 : f32
      %12 = vector.broadcast %cst_9 : f32 to vector<256x128xf32>
      %c0_10 = arith.constant 0 : index
      %c0_11 = arith.constant 0 : index
      %13 = vector.load %arg9[%c0_10, %c0_11] : memref<256x128xf32, #tpu.memory_space<vmem>>, vector<256x128xf32>
      tpu.vector_store %arg9[%c0_10, %c0_11], %12 {strides = array<i32>} : memref<256x128xf32, #tpu.memory_space<vmem>>, vector<256x128xf32>,
    } else {
    }
    %c0 = arith.constant 0 : index
    %c0_1 = arith.constant 0 : index
    %3 = vector.load %arg9[%c0, %c0_1] : memref<256x128xf32, #tpu.memory_space<vmem>>, vector<256x128xf32>
    %c0_2 = arith.constant 0 : index
    %c0_3 = arith.constant 0 : index
    %4 = vector.load %arg2[%c0_2, %c0_3] : memref<256x256xbf16, #tpu.memory_space<vmem>>, vector<256x256xbf16>
    %c0_4 = arith.constant 0 : index
    %c0_5 = arith.constant 0 : index
    %5 = vector.load %arg3[%c0_4, %c0_5] : memref<256x128xbf16, #tpu.memory_space<vmem>>, vector<256x128xbf16>
    %cst = arith.constant dense<0.000000e+00> : vector<256x128xf32>
    %6 = tpu.matmul %4, %5, %cst {dimension_numbers = #tpu.dot_dimension_numbers<[1], [0], [0], [1], [0, 0, 1, 1], [], []>} : vector<256x256xbf16>, vector<256x128xbf16>, vector<256x128xf32> -> vector<256x128xf32>
    %7 = arith.addf %3, %6 : vector<256x128xf32>
    %c0_6 = arith.constant 0 : index
    %c0_7 = arith.constant 0 : index
    %8 = vector.load %arg9[%c0_6, %c0_7] : memref<256x128xf32, #tpu.memory_space<vmem>>, vector<256x128xf32>
    tpu.vector_store %arg9[%c0_6, %c0_7], %7 {strides = array<i32>} : memref<256x128xf32, #tpu.memory_space<vmem>>, vector<256x128xf32>,
    %c1_i32 = arith.constant 1 : i32
    %9 = arith.cmpi eq, %arg1, %c1_i32 : i32
    %10 = arith.extui %9 : i1 to i32
    %c0_i32_8 = arith.constant 0 : i32
    %11 = arith.cmpi ne, %10, %c0_i32_8 : i32
    scf.if %11 {
      %c0_9 = arith.constant 0 : index
      %c0_10 = arith.constant 0 : index
      %12 = vector.load %arg9[%c0_9, %c0_10] : memref<256x128xf32, #tpu.memory_space<vmem>>, vector<256x128xf32>
      %c0_11 = arith.constant 0 : index
      %c0_12 = arith.constant 0 : index
      %13 = vector.load %arg5[%c0_11, %c0_12] : memref<128x128xf32, #tpu.memory_space<vmem>>, vector<128x128xf32>
      %cst_13 = arith.constant dense<0.000000e+00> : vector<256x128xf32>
      %14 = tpu.matmul %12, %13, %cst_13 {dimension_numbers = #tpu.dot_dimension_numbers<[1], [0], [0], [1], [0, 0, 1, 1], [], []>} : vector<256x128xf32>, vector<128x128xf32>, vector<256x128xf32> -> vector<256x128xf32>
      %c0_14 = arith.constant 0 : index
      %c0_15 = arith.constant 0 : index
      %15 = vector.load %arg4[%c0_14, %c0_15] : memref<256x128xbf16, #tpu.memory_space<vmem>>, vector<256x128xbf16>
      %16 = arith.extf %15 : vector<256x128xbf16> to vector<256x128xf32>
      %c0_16 = arith.constant 0 : index
      %c0_17 = arith.constant 0 : index
      %17 = vector.load %arg6[%c0_16, %c0_17] : memref<128x128xf32, #tpu.memory_space<vmem>>, vector<128x128xf32>
      %cst_18 = arith.constant dense<0.000000e+00> : vector<256x128xf32>
      %18 = tpu.matmul %16, %17, %cst_18 {dimension_numbers = #tpu.dot_dimension_numbers<[1], [0], [0], [1], [0, 0, 1, 1], [], []>} : vector<256x128xf32>, vector<128x128xf32>, vector<256x128xf32> -> vector<256x128xf32>
      %19 = arith.addf %14, %18 : vector<256x128xf32>
      %c0_19 = arith.constant 0 : index
      %c0_20 = arith.constant 0 : index
      %20 = vector.load %arg7[%c0_19, %c0_20] : memref<1x128xf32, #tpu.memory_space<vmem>>, vector<1x128xf32>
      %21 = vector.broadcast %20 : vector<1x128xf32> to vector<256x128xf32>
      %22 = arith.addf %19, %21 : vector<256x128xf32>
      %cst_21 = arith.constant 0.000000e+00 : f32
      %23 = vector.broadcast %cst_21 : f32 to vector<256x128xf32>
      %24 = arith.maximumf %22, %23 : vector<256x128xf32>
      %25 = arith.truncf %24 : vector<256x128xf32> to vector<256x128xbf16>
      %c0_22 = arith.constant 0 : index
      %c0_23 = arith.constant 0 : index
      %26 = vector.load %arg8[%c0_22, %c0_23] : memref<256x128xbf16, #tpu.memory_space<vmem>>, vector<256x128xbf16>
      tpu.vector_store %arg8[%c0_22, %c0_23], %25 {strides = array<i32>} : memref<256x128xbf16, #tpu.memory_space<vmem>>, vector<256x128xbf16>,
    } else {
    }
    return
  }
  func.func @transform_0(%arg0: i32, %arg1: i32) -> (i32, i32) {
    %c0_i32 = arith.constant 0 : i32
    return %arg0, %arg1 : i32, i32
  }
  func.func @transform_1(%arg0: i32, %arg1: i32) -> (i32, i32) {
    %c0_i32 = arith.constant 0 : i32
    %c0_i32_0 = arith.constant 0 : i32
    return %arg1, %c0_i32 : i32, i32
  }
  func.func @transform_2(%arg0: i32, %arg1: i32) -> (i32, i32) {
    %c0_i32 = arith.constant 0 : i32
    %c0_i32_0 = arith.constant 0 : i32
    return %arg0, %c0_i32 : i32, i32
  }
  func.func @transform_3(%arg0: i32, %arg1: i32) -> (i32, i32) {
    %c0_i32 = arith.constant 0 : i32
    %c0_i32_0 = arith.constant 0 : i32
    %c0_i32_1 = arith.constant 0 : i32
    return %c0_i32, %c0_i32_0 : i32, i32
  }
  func.func @transform_4(%arg0: i32, %arg1: i32) -> (i32, i32) {
    %c0_i32 = arith.constant 0 : i32
    %c0_i32_0 = arith.constant 0 : i32
    %c0_i32_1 = arith.constant 0 : i32
    return %c0_i32, %c0_i32_0 : i32, i32
  }
  func.func @transform_5(%arg0: i32, %arg1: i32) -> (i32, i32) {
    %c0_i32 = arith.constant 0 : i32
    %c0_i32_0 = arith.constant 0 : i32
    %c0_i32_1 = arith.constant 0 : i32
    return %c0_i32, %c0_i32_0 : i32, i32
  }
  func.func @transform_6(%arg0: i32, %arg1: i32) -> (i32, i32) {
    %c0_i32 = arith.constant 0 : i32
    %c0_i32_0 = arith.constant 0 : i32
    return %arg0, %c0_i32 : i32, i32
  }
}

</mosaic_0001>

<bundles_post_ra>
// kernel: tpu_custom_call.1
= control target key start
LH: loop header
LB: loop body
LE: loop exit
PB: predicated region body
PF: predicated region fallthrough
CT: control target
= control target key end

     0   :  { %s4083_s0 = inlined_call_operand.hbm [shape: bf16[512,512], index: 0, kind: input, shape index: {}]   ;;  %s4084_s1 = inlined_call_operand.hbm [shape: bf16[512,128], index: 1, kind: input, shape index: {}]   ;;  %s4085_s2 = inlined_call_operand.hbm [shape: bf16[512,128], index: 2, kind: input, shape index: {}]   ;;  %s4086_s3 = inlined_call_operand.hbm [shape: f32[128,128], index: 3, kind: input, shape index: {}]   ;;  %s4087_s4 = inlined_call_operand.hbm [shape: f32[128,128], index: 4, kind: input, shape index: {}]   ;;  %s4088_s5 = inlined_call_operand.hbm [shape: f32[1,128], index: 5, kind: input, shape index: {}]   ;;  %s4089_s6 = inlined_call_operand.hbm [shape: bf16[512,128], index: 6, kind: output, shape index: {}]  }
   0x1   :  { %4113 = sst [smem:[#allocation31_spill]] %s4084_s1 }
   0x2   :  { %4114 = sst [smem:[#allocation32_spill]] %s4085_s2 }
   0x3   :  { %4115 = sst [smem:[#allocation33_spill]] %s4086_s3 }
   0x4   :  { %4116 = sst [smem:[#allocation34_spill]] %s4089_s6 }
   0x5   :  { %11 = vsyncpa [#allocation4], 0 }
   0x6   :  { %13 = vsyncpa [#allocation4 + $0x1], 0 }
   0x7   :  { %14 = vsyncpa [#allocation7], 0 }
   0x8   :  { %16 = vsyncpa [#allocation7 + $0x1], 0 }
   0x9   :  { %17 = vsyncpa [#allocation10], 0 }
   0xa   :  { %18 = vsyncpa [#allocation13], 0 }
   0xb   :  { %19 = vsyncpa [#allocation5], 0 }
   0xc   :  { %21 = vsyncpa [#allocation5 + $0x1], 0  ;;  %s3442_s21 = smov 0   ;;  %s3444_s22 = smov 0  }
   0xd   :  { %s3446_s23 = smov 0   ;;  %s3448_s24 = smov 0  }
   0xe   :  { %s3450_s25 = smov 0   ;;  %s3452_s26 = smov 0  }
   0xf   :  { %s3454_s27 = smov 0   ;;  %s3456_s28 = smov 0  }
  0x10   :  { %s3458_s29 = smov 0   ;;  %s3460_s30 = smov 0  }
  0x11   :  { %s3462_s7 = smov 0   ;;  %s3464_s8 = smov 0  }
  0x12   :  { %s3466_s9 = smov 0   ;;  %s3468_s10 = smov 0  }
  0x13 LB: > { %4117 = sst [smem:[#allocation21_spill]] %s3338_s21  ;;  %s3513_s11 = sadd.s32 4294967295, %s3390_s10   ;;  %s3390_s10 = sphi %s3468_s10, %s27_s10   ;;  %s3386_s9 = sphi %s3466_s9, %s4195_s9   ;;  %s3382_s8 = sphi %s3464_s8, %s4194_s8   ;;  %s3378_s7 = sphi %s3462_s7, %s4193_s7   ;;  %s3374_s30 = sphi %s3460_s30, %s4192_s30   ;;  %s3370_s29 = sphi %s3458_s29, %s4191_s29   ;;  %s3366_s28 = sphi %s3456_s28, %s4190_s28   ;;  %s3362_s27 = sphi %s3454_s27, %s4189_s27   ;;  %s3358_s26 = sphi %s3452_s26, %s4182_s26   ;;  %s3354_s25 = sphi %s3450_s25, %s4181_s25   ;;  %s3350_s24 = sphi %s3448_s24, %s4188_s24   ;;  %s3346_s23 = sphi %s3446_s23, %s4187_s23   ;;  %s3342_s22 = sphi %s3444_s22, %s4186_s22   ;;  %s3338_s21 = sphi %s3442_s21, %s4185_s21  }
  0x14   : > { %4118 = sst [smem:[#allocation22_spill]] %s3354_s25  ;;  %p2013_p0 = scmp.ge.s32.totalorder %s3390_s10, 1 }
  0x15   : > { %4119 = sst [smem:[#allocation23_spill]] %s3358_s26  ;;  %p4091_p1 = scmp.eq.s32.totalorder %s3513_s11, 0 }
  0x16   : > { %4120 = sst [smem:[#allocation24_spill]] %s3374_s30  ;;  %p213_p3 = scmp.lt.s32.totalorder %s3390_s10, 5 }
  0x17   : > { %4121 = sst [smem:[#allocation25_spill]] %s3378_s7  ;;  %s3392_s13 = smov [#allocation9]  }
  0x18   : > { %p3519_p4 = pnand %p2013_p0, %p213_p3  ;;  %s225_s14 = sshll.u32 %s3392_s13, 4  ;;  %s226_s14 = int_to_ptr.vmem [resolvable:$true] %s225_s14 }
  0x19   : > { %s4125_s3 = sld [smem:[#allocation33_spill]] }
  0x1a   : > { %s4122_s12 = scalar_select %p3519_p4, 1, 0 }
  0x1b   : > { %p2835_p5 = pneg %p3519_p4 }
  0x1c   : > { %4123 = sst [smem:[#allocation26_spill]] %s4122_s12 }
  0x1d   : > { %p3527_p6 = pnand %p2835_p5, %p4091_p1 }
  0x1f   : > { %s4124_s15 = scalar_select %p3527_p6, 1, 0 }
  0x20   : > { %s3054_s18 = scalar_lea.hbm %s4125_s3, 2048  ;;  %p3539_p8 = pneg %p3527_p6 }
  0x21   : > { %p3055_p7 = scmp.ne.s32.totalorder %s4125_s3, %s3054_s18  ;;  %p3061_p11 = scmp.lt.u32.totalorder %s3054_s18, %s4125_s3 }
  0x23   : > { %p3057_p9 = pnand %p3539_p8, %p3055_p7 }
  0x25   : > { %p3058_p10 = pneg %p3057_p9 }
  0x27   : > { %p3063_p12 = pnand %p3061_p11, %p3058_p10 }
  0x29   : > { %3066 = shalt.err (!%p3063_p12)
}
  0x2a   : > { %s3067_s16 = scalar_lea.vmem %s226_s14, 2048  ;;  %p3075_p5 = scmp.lt.s32.totalorder %s226_s14, %s226_s14 }
  0x2b   : > { %p3068_p13 = scmp.ne.s32.totalorder %s226_s14, %s3067_s16  ;;  %p3076_p2 = scmp.lt.s32.totalorder %s3067_s16, %s3067_s16 }
  0x2d   : > { %p3070_p0 = pnand %p3068_p13, %p3539_p8  ;;  %p3077_p1 = por %p3076_p2, %p3075_p5 }
  0x2f   : > { %p3071_p3 = pneg %p3070_p0 }
  0x31   : > { %p3078_p4 = pnand %p3077_p1, %p3071_p3 }
  0x33   : > { %3081 = shalt.err (!%p3078_p4)
}
  0x34   : > { %s4093_s17 = smov 128   ;;  %s4095_s6 = smov 8  }
  0x35   : > { %2838 = dma.hbm_to_vmem [thread:$0]  (!%p3527_p6), %s4125_s3, 2048, %s226_s14, [#allocation10], %s4093_s17, %s4093_s17, %s4095_s6  }
  0x36   : > { %s36_s19 = sadd.s32 1, %s3382_s8  ;;  %s39_s20 = sadd.s32 1, %s3386_s9 }
  0x37   : > { %p37_p1 = scmp.ge.s32.totalorder %s36_s19, 2  ;;  %p4104_p2 = scmp.eq.s32.totalorder %s3390_s10, 0 }
  0x38   : > { %s74_s16 = sadd.s32 1, %s3358_s26  ;;  %p81_p4 = scmp.ne.s32.totalorder %s3358_s26, %s3354_s25 }
  0x39   : > { %s4197_s19 = smov (%p37_p1, %s36_s19), 0  ;;  %s4199_s20 = smov (!%p37_p1, %s39_s20), %s3386_s9 }
  0x3a   : > { %4127 = sst [smem:[#allocation27_spill]] %s4197_s19  ;;  %s44_s30 = ssub.s32 %s3382_s8, %s4197_s19 }
  0x3b   : > { %p3571_p7 = por %p81_p4, %p4104_p2  ;;  %p41_p9 = scmp.ge.s32.totalorder %s4199_s20, 2 }
  0x3c   : > { %p72_p10 = scmp.eq.s32.totalorder %s44_s30, 0  ;;  %p87_p11 = scmp.ne.s32.totalorder %s3354_s25, %s3350_s24 }
  0x3d   : > { %p4103_p12 = scmp.lt.s32.totalorder %s3390_s10, 4  ;;  %s4201_s20 = smov (%p41_p9, %s4199_s20), 0 }
  0x3e   : > { %4129 = sst [smem:[#allocation28_spill]] %s4201_s20  ;;  %s3585_s18 = ssub.s32 %s3386_s9, %s4201_s20 }
  0x3f   : > { %s3581_s7 = scalar_select %p72_p10, %s3358_s26, %s74_s16  }
  0x40   : > { %p4131_p13 = scmp.eq.s32.totalorder %s3513_s11, 0  ;;  %s45_s6 = sor.u32 %s44_s30, %s3585_s18 }
  0x41   : > { %4130 = sst [smem:[#allocation29_spill]] %s3581_s7  ;;  %p3595_p5 = scmp.eq.s32.totalorder %s45_s6, 0 }
  0x42   : > { %p3589_p0 = por %p87_p11, %p4131_p13  ;;  %s287_s3 = sand.u32 1, %s3390_s10  }
  0x43   : > { %s4134_s24 = scalar_select %p3595_p5, 1, 0 }
  0x44   : > { %s4132_s17 = scalar_select %p3589_p0, 1, 0 }
  0x45   : > { %s289_s19 = sand.u32 1, %s3358_s26   ;;  %s2126_s16 = sshll.u32 %s3382_s8, 11 }
  0x46   : > { %4133 = sst [smem:[#allocation30_spill]] %s4132_s17  ;;  %s2023_s25 = sshll.u32 %s289_s19, 7 }
  0x47   : > { %s4135_s1 = sld [smem:[#allocation31_spill]]  ;;  %s291_s17 = scalar_lea.vmem [#allocation6], %s2023_s25 }
  0x48   : > { %s298_s30 = sshll.u32 %s291_s17, 4  ;;  %p3611_p1 = pnand %p4103_p12, %p3571_p7  ;;  %s3615_s30 = int_to_ptr.vmem [resolvable:$true] %s298_s30 }
  0x49   : > { %s3617_s19 = scalar_lea.sflag [#allocation7], %s287_s3 }
  0x4a   : > { %p3084_p9 = pneg %p3611_p1 }
  0x4d   : > { %s3605_s12 = scalar_lea.hbm %s4135_s1, %s2126_s16  ;;  %s3087_s14 = scalar_lea.hbm %s4135_s1, 4096 }
  0x4e   : > { %s3082_s20 = scalar_lea.hbm %s3605_s12, 2048  ;;  %p3088_p7 = scmp.lt.u32.totalorder %s3605_s12, %s4135_s1 }
  0x4f   : > { %p3083_p4 = scmp.ne.s32.totalorder %s3605_s12, %s3082_s20  ;;  %p3089_p13 = scmp.lt.u32.totalorder %s3087_s14, %s3082_s20 }
  0x50   : > { %p3091_p12 = scmp.lt.u32.totalorder %s3082_s20, %s3605_s12 }
  0x51   : > { %p3085_p10 = pnand %p3084_p9, %p3083_p4  ;;  %p3090_p3 = por %p3089_p13, %p3088_p7 }
  0x53   : > { %p3086_p11 = pneg %p3085_p10  ;;  %p3092_p2 = por %p3091_p12, %p3090_p3 }
  0x55   : > { %p3093_p0 = pnand %p3092_p2, %p3086_p11 }
  0x57   : > { %3096 = shalt.err (!%p3093_p0)
}
  0x58   : > { %s3097_s3 = scalar_lea.vmem %s3615_s30, 2048  ;;  %s3395_s25 = smov [#allocation6]  }
  0x59   : > { %p3098_p4 = scmp.ne.s32.totalorder %s3615_s30, %s3097_s3  ;;  %s3102_s17 = sshll.u32 %s3395_s25, 4  ;;  %s3103_s17 = int_to_ptr.vmem [resolvable:$false] %s3102_s17 }
  0x5a   : > { %s3104_s7 = scalar_lea.vmem %s3103_s17, 4096  ;;  %p3105_p6 = scmp.lt.s32.totalorder %s3615_s30, %s3103_s17 }
  0x5b   : > { %p3100_p10 = pnand %p3098_p4, %p3084_p9  ;;  %p3106_p7 = scmp.lt.s32.totalorder %s3104_s7, %s3097_s3 }
  0x5d   : > { %p3101_p5 = pneg %p3100_p10  ;;  %p3107_p13 = por %p3106_p7, %p3105_p6 }
  0x5f   : > { %p3108_p12 = pnand %p3107_p13, %p3101_p5 }
  0x61   : > { %3111 = shalt.err (!%p3108_p12)
}
  0x62   : > { %s4110_s20 = smov 64   ;;  %s3397_s14 = smov 4  }
  0x63   : > { %2851 = dma.hbm_to_vmem [thread:$0]  (!%p3611_p1), %s3605_s12, 2048, %s3615_s30, %s3617_s19, %s4110_s20, %s4110_s20, %s3397_s14  }
  0x64   : > { %s3398_s16 = smov [#allocation11]   ;;  %s3399_s1 = smov [#allocation12]  }
  0x65   : > { %s238_s25 = sshll.u32 %s3398_s16, 4  ;;  %s252_s17 = sshll.u32 %s3399_s1, 4  ;;  %s239_s25 = int_to_ptr.vmem [resolvable:$true] %s238_s25  ;;  %s3648_s17 = int_to_ptr.vmem [resolvable:$true] %s252_s17 }
  0x66   : > { %s3112_s26 = scalar_lea.hbm %s4087_s4, 2048 }
  0x67   : > { %p3113_p6 = scmp.ne.s32.totalorder %s4087_s4, %s3112_s26  ;;  %p3119_p3 = scmp.lt.u32.totalorder %s3112_s26, %s4087_s4 }
  0x69   : > { %p3115_p2 = pnand %p3113_p6, %p3539_p8 }
  0x6b   : > { %p3116_p0 = pneg %p3115_p2 }
  0x6d   : > { %p3121_p5 = pnand %p3119_p3, %p3116_p0 }
  0x6f   : > { %3124 = shalt.err (!%p3121_p5)
}
  0x70   : > { %s3125_s1 = scalar_lea.vmem %s239_s25, 2048  ;;  %p3133_p4 = scmp.lt.s32.totalorder %s239_s25, %s239_s25 }
  0x71   : > { %p3126_p1 = scmp.ne.s32.totalorder %s239_s25, %s3125_s1  ;;  %p3134_p10 = scmp.lt.s32.totalorder %s3125_s1, %s3125_s1 }
  0x73   : > { %p3128_p9 = pnand %p3126_p1, %p3539_p8  ;;  %p3135_p7 = por %p3134_p10, %p3133_p4 }
  0x75   : > { %p3129_p11 = pneg %p3128_p9 }
  0x77   : > { %p3136_p13 = pnand %p3135_p7, %p3129_p11 }
  0x79   : > { %3139 = shalt.err (!%p3136_p13)
}
  0x7a   : > { %p4137_p12 = scmp.ne.s32.totalorder %s4124_s15, 0  ;;  %s4138_s2 = smov 8  }
  0x7b   : > { %s4139_s21 = smov 128   ;;  %s3140_s7 = scalar_lea.hbm %s4088_s5, 16 }
  0x7c   : > { %2841 = dma.hbm_to_vmem [thread:$0]  (!%p4137_p12), %s4087_s4, 2048, %s239_s25, [#allocation10], %s4139_s21, %s4139_s21, %s4138_s2  }
  0x7d   : > { %p3141_p6 = scmp.ne.s32.totalorder %s4088_s5, %s3140_s7  ;;  %p3147_p3 = scmp.lt.u32.totalorder %s3140_s7, %s4088_s5 }
  0x7f   : > { %p3143_p2 = pnand %p3141_p6, %p3539_p8 }
  0x81   : > { %p3144_p0 = pneg %p3143_p2 }
  0x83   : > { %p3149_p5 = pnand %p3147_p3, %p3144_p0 }
  0x85   : > { %3152 = shalt.err (!%p3149_p5)
}
  0x86   : > { %s3153_s25 = scalar_lea.vmem %s3648_s17, 16  ;;  %s3160_s30 = scalar_lea.vmem %s3648_s17, 32 }
  0x87   : > { %p3154_p1 = scmp.ne.s32.totalorder %s3648_s17, %s3153_s25  ;;  %p3161_p4 = scmp.lt.s32.totalorder %s3648_s17, %s3648_s17 }
  0x88   : > { %p3162_p10 = scmp.lt.s32.totalorder %s3160_s30, %s3153_s25 }
  0x89   : > { %p3156_p9 = pnand %p3154_p1, %p3539_p8 }
  0x8a   : > { %p3163_p7 = por %p3162_p10, %p3161_p4 }
  0x8b   : > { %p3157_p11 = pneg %p3156_p9 }
  0x8d   : > { %p3164_p13 = pnand %p3163_p7, %p3157_p11 }
  0x8f   : > { %3167 = shalt.err (!%p3164_p13)
}
  0x90   : > { %2844 = dma.hbm_to_vmem [thread:$0]  (!%p4137_p12), %s4088_s5, 16, %s3648_s17, [#allocation13]  }
  0x91   : > { %s48_s13 = sadd.s32 1, %s3370_s29  ;;  %p55_p8 = scmp.ne.s32.totalorder %s3370_s29, %s3366_s28 }
  0x92   : > { %p4140_p6 = scmp.ne.s32.totalorder %s4134_s24, 0  ;;  %p4141_p2 = scmp.eq.s32.totalorder %s3390_s10, 0 }
  0x93   : > { %p61_p3 = scmp.ne.s32.totalorder %s3366_s28, %s3362_s27  ;;  %s263_s3 = sand.u32 1, %s3370_s29  }
  0x94   : > { %s3701_s15 = scalar_select %p4140_p6, %s3370_s29, %s48_s13  }
  0x95   : > { %p3705_p0 = por %p4141_p2, %p55_p8  ;;  %s2020_s7 = sshll.u32 %s3382_s8, 1 }
  0x96   : > { %p4143_p5 = scmp.eq.s32.totalorder %s3513_s11, 0  ;;  %s2018_s17 = sshll.u32 %s263_s3, 8 }
  0x97   : > { %s2125_s12 = sshll.u32 %s3386_s9, 7  ;;  %s267_s25 = scalar_lea.vmem [#allocation3], %s2018_s17 }
  0x98   : > { %p3715_p1 = por %p4143_p5, %p61_p3  ;;  %s274_s1 = sadd.s32 %s2125_s12, %s2020_s7 }
  0x99   : > { %s2022_s24 = sshll.u32 %s274_s1, 6  ;;  %s277_s30 = sshll.u32 %s267_s25, 4  ;;  %s3725_s30 = int_to_ptr.vmem [resolvable:$true] %s277_s30 }
  0x9a   : > { %s3723_s13 = scalar_lea.hbm %s4083_s0, %s2022_s24  ;;  %p4145_p12 = scmp.lt.s32.totalorder %s3390_s10, 4 }
  0x9b   : > { %s3735_s7 = scalar_lea.sflag [#allocation4], %s263_s3  ;;  %s3168_s17 = scalar_lea.hbm %s3723_s13, 4096 }
  0x9c   : > { %p3731_p9 = pnand %p4145_p12, %p3705_p0  ;;  %p3169_p11 = scmp.ne.s32.totalorder %s3723_s13, %s3168_s17 }
  0x9d   : > { %s3173_s16 = scalar_lea.hbm %s4083_s0, 16384  ;;  %p3174_p13 = scmp.lt.u32.totalorder %s3723_s13, %s4083_s0 }
  0x9e   : > { %p3170_p4 = pneg %p3731_p9  ;;  %p3175_p8 = scmp.lt.u32.totalorder %s3173_s16, %s3168_s17 }
  0x9f   : > { %p3177_p2 = scmp.lt.u32.totalorder %s3168_s17, %s3723_s13 }
  0xa0   : > { %p3171_p10 = pnand %p3170_p4, %p3169_p11  ;;  %p3176_p6 = por %p3175_p8, %p3174_p13 }
  0xa2   : > { %p3172_p7 = pneg %p3171_p10  ;;  %p3178_p0 = por %p3177_p2, %p3176_p6 }
  0xa4   : > { %p3179_p3 = pnand %p3178_p0, %p3172_p7 }
  0xa6   : > { %3182 = shalt.err (!%p3179_p3)
}
  0xa7   : > { %s3183_s3 = scalar_lea.vmem %s3725_s30, 4096  ;;  %s3400_s20 = smov [#allocation3]  }
  0xa8   : > { %p3184_p5 = scmp.ne.s32.totalorder %s3725_s30, %s3183_s3  ;;  %s3188_s26 = sshll.u32 %s3400_s20, 4  ;;  %s3189_s26 = int_to_ptr.vmem [resolvable:$false] %s3188_s26 }
  0xa9   : > { %s3190_s12 = scalar_lea.vmem %s3189_s26, 8192  ;;  %p3191_p10 = scmp.lt.s32.totalorder %s3725_s30, %s3189_s26 }
  0xaa   : > { %p3186_p12 = pnand %p3184_p5, %p3170_p4  ;;  %p3192_p13 = scmp.lt.s32.totalorder %s3190_s12, %s3183_s3 }
  0xac   : > { %p3187_p11 = pneg %p3186_p12  ;;  %p3193_p8 = por %p3192_p13, %p3191_p10 }
  0xae   : > { %p3194_p6 = pnand %p3193_p8, %p3187_p11 }
  0xb0   : > { %3197 = shalt.err (!%p3194_p6)
}
  0xb1   : > { %s3401_s17 = smov 256   ;;  %s4147_s1 = sld [smem:[#allocation21_spill]] }
  0xb2   : > { %2848 = dma.hbm_to_vmem [thread:$0]  (!%p3731_p9), %s3723_s13, 4096, %s3725_s30, %s3735_s7, %s3401_s17, %s4139_s21, %s4138_s2  }
  0xb3   : > { %s2012_s27 = sadd.s32 4294967294, %s3390_s10   ;;  %s100_s16 = sadd.s32 1, %s3346_s23 }
  0xb4   : > { %p107_p4 = scmp.ne.s32.totalorder %s3346_s23, %s3342_s22  ;;  %p4148_p7 = scmp.eq.s32.totalorder %s3585_s18, 0 }
  0xb5   : > { %p4149_p2 = scmp.eq.s32.totalorder %s3390_s10, 0  ;;  %p4151_p5 = scmp.eq.s32.totalorder %s3513_s11, 3 }
  0xb6   : > { %s3772_s24 = scalar_select %p4148_p7, %s3346_s23, %s100_s16  }
  0xb7   : > { %p3776_p0 = por %p107_p4, %p4149_p2  ;;  %p113_p3 = scmp.ne.s32.totalorder %s3342_s22, %s4147_s1 }
  0xb8   : > { %p3784_p12 = por %p4151_p5, %p107_p4  ;;  %p206_p9 = scmp.eq.s32.totalorder %s2012_s27, 3 }
  0xb9   : > { %p4153_p11 = scmp.eq.s32.totalorder %s3513_s11, 0  ;;  %s310_s18 = sand.u32 1, %s3346_s23  }
  0xba   : > { %s4152_s3 = scalar_select %p3784_p12, 1, 0 }
  0xbb   : > { %p3790_p10 = por %p113_p3, %p4153_p11  ;;  %p3795_p13 = por %p206_p9, %p113_p3 }
  0xbc   : > { %s2026_s30 = sshll.u32 %s310_s18, 7  ;;  %s2127_s13 = sshll.u32 %s3386_s9, 11 }
  0xbd   : > { %s4154_s2 = scalar_select %p3790_p10, 1, 0 }
  0xbe   : > { %s4155_s21 = scalar_select %p3795_p13, 1, 0 }
  0xbf   : > { %s4156_s26 = sld [smem:[#allocation32_spill]]  ;;  %s312_s1 = scalar_lea.vmem [#allocation8], %s2026_s30 }
  0xc0   : > { %s319_s27 = sshll.u32 %s312_s1, 4  ;;  %p4158_p8 = scmp.lt.s32.totalorder %s3390_s10, 4  ;;  %s3805_s27 = int_to_ptr.vmem [resolvable:$true] %s319_s27 }
  0xc2   : > { %p3811_p6 = pnand %p4158_p8, %p3776_p0 }
  0xc4   : > { %p3200_p7 = pneg %p3811_p6 }
  0xc5   : > { %s4157_s12 = smov %s4156_s26  ;;  %s3803_s17 = scalar_lea.hbm %s4156_s26, %s2127_s13 }
  0xc6   : > { %s3198_s18 = scalar_lea.hbm %s3803_s17, 2048  ;;  %s3203_s7 = scalar_lea.hbm %s4157_s12, 4096 }
  0xc7   : > { %p3199_p4 = scmp.ne.s32.totalorder %s3803_s17, %s3198_s18  ;;  %p3204_p0 = scmp.lt.u32.totalorder %s3803_s17, %s4157_s12 }
  0xc8   : > { %p3205_p5 = scmp.lt.u32.totalorder %s3203_s7, %s3198_s18  ;;  %p3207_p11 = scmp.lt.u32.totalorder %s3198_s18, %s3803_s17 }
  0xc9   : > { %p3201_p2 = pnand %p3200_p7, %p3199_p4 }
  0xca   : > { %p3206_p9 = por %p3205_p5, %p3204_p0 }
  0xcb   : > { %p3202_p3 = pneg %p3201_p2 }
  0xcc   : > { %p3208_p8 = por %p3207_p11, %p3206_p9 }
  0xce   : > { %p3209_p13 = pnand %p3208_p8, %p3202_p3 }
  0xd0   : > { %3212 = shalt.err (!%p3209_p13)
}
  0xd1   : > { %s3213_s26 = scalar_lea.vmem %s3805_s27, 2048  ;;  %s3402_s1 = smov [#allocation8]  }
  0xd2   : > { %p3214_p4 = scmp.ne.s32.totalorder %s3805_s27, %s3213_s26  ;;  %s3218_s30 = sshll.u32 %s3402_s1, 4  ;;  %s3219_s30 = int_to_ptr.vmem [resolvable:$false] %s3218_s30 }
  0xd3   : > { %s3220_s13 = scalar_lea.vmem %s3219_s30, 4096  ;;  %p3221_p10 = scmp.lt.s32.totalorder %s3805_s27, %s3219_s30 }
  0xd4   : > { %p3216_p2 = pnand %p3214_p4, %p3200_p7  ;;  %p3222_p0 = scmp.lt.s32.totalorder %s3220_s13, %s3213_s26 }
  0xd6   : > { %p3217_p12 = pneg %p3216_p2  ;;  %p3223_p5 = por %p3222_p0, %p3221_p10 }
  0xd8   : > { %p3224_p9 = pnand %p3223_p5, %p3217_p12 }
  0xda   : > { %3227 = shalt.err (!%p3224_p9)
}
  0xdb   : > { %s4160_s18 = smov 64   ;;  %s4161_s7 = sld [smem:[#allocation26_spill]] }
  0xdc   : > { %2854 = dma.hbm_to_vmem [thread:$0]  (!%p3811_p6), %s3803_s17, 2048, %s3805_s27, %s3617_s19, %s4160_s18, %s4160_s18, %s3397_s14  }
  0xe1   : > { %p4162_p13 = scmp.ne.s32.totalorder %s4161_s7, 0 }
  0xe2   : > { %s333_s25 = sand.u32 (!%p4162_p13), 1, %s3366_s28  }
  0xe3   : > { %331 = sbr.rel (%p4162_p13) target bundleno = 911 (0x38f), region = 44  ;;  %s2030_s20 = sshll.u32 (!%p4162_p13), %s333_s25, 8 }
  0xe4   : > { %s334_s26 = scalar_lea.sflag (!%p4162_p13), [#allocation4], %s333_s25  ;;  %s3847_s1 = scalar_lea.vmem (!%p4162_p13), [#allocation3], %s2030_s20 }
  0xea   : > { %3313 = dma.done.wait (%p3715_p1), %s334_s26, 4096  }
  0xeb   : > { %3315 = vsyncadd (%p3715_p1), %s334_s26, 4294963200  ;;  %s4163_s16 = sld [smem:[#allocation22_spill]]  ;;  %s4164_s30 = sld [smem:[#allocation30_spill]] }
  0xec   : > { %s342_s13 = sand.u32 1, %s3513_s11  }
  0xed   : > { %s343_s17 = scalar_lea.sflag [#allocation7], %s342_s13 }
  0xf1   : > { %s344_s19 = sand.u32 1, %s4163_s16   ;;  %p4165_p12 = scmp.ne.s32.totalorder %s4164_s30, 0 }
  0xf2   : > { %s2031_s14 = sshll.u32 %s344_s19, 7 }
  0xf3   : > { %s3855_s27 = scalar_lea.vmem [#allocation6], %s2031_s14 }
  0xf4   : > { %3317 = dma.done.wait (%p4165_p12), %s343_s17, 2048  }
  0xf5   : > { %3319 = vsyncadd (%p4165_p12), %s343_s17, 4294965248  ;;  %s353_s18 = sand.u32 1, %s3342_s22   ;;  %p4166_p1 = scmp.ne.s32.totalorder %s4154_s2, 0 }
  0xf6   : > { %s2032_s6 = sshll.u32 %s353_s18, 7 }
  0xf7   : > { %s3864_s7 = scalar_lea.vmem [#allocation8], %s2032_s6 }
  0xf8   : > { %3321 = dma.done.wait (%p4166_p1), %s343_s17, 2048  }
  0xf9   : > { %3323 = vsyncadd (%p4166_p1), %s343_s17, 4294965248  ;;  %p4167_p10 = scmp.eq.s32.totalorder %s3513_s11, 0 }
  0xfb   : > { %3325 = dma.done.wait (%p4167_p10), [#allocation10], 4096   ;;  %p4168_p6 = pmov %p4167_p10 }
  0xfd   : > { %3327 = vsyncadd (%p4168_p6), [#allocation10], 4294963200  ;;  %p4169_p7 = pmov %p4168_p6 }
  0xfe   : > { %p4170_p3 = pmov %p4168_p6 }
  0xff   : > { %3329 = dma.done.wait (%p4169_p7), [#allocation13], 16  }
 0x100   : > { %3331 = vsyncadd (%p4170_p3), [#allocation13], 4294967280  ;;  %s3878_s25 = scalar_lea.vmem [#allocation14], %s2032_s6  ;;  %s4171_s20 = sld [smem:[#allocation24_spill]] }
 0x106   : > { %p2037_p11 = scmp.ne.s32.totalorder %s4171_s20, 0 }
 0x107   : > { %v3403_v0 = vmov (!%p2037_p11), 0.0  }
 0x108   : > { %415 = sbr.rel (%p2037_p11) target bundleno = 280 (0x118), region = 72  ;;  %416 = vst [vmem:[#allocation2] sm:$0xff] (!%p2037_p11), %v3403_v0  ;;  %417 = vst [vmem:[#allocation2 + $0x8] sm:$0xff] (!%p2037_p11), %v3403_v0 }
 0x109   : > { %418 = vst [vmem:[#allocation2 + $0x10] sm:$0xff] (!%p2037_p11), %v3403_v0  ;;  %419 = vst [vmem:[#allocation2 + $0x18] sm:$0xff] (!%p2037_p11), %v3403_v0 }
 0x10a   : > { %420 = vst [vmem:[#allocation2 + $0x20] sm:$0xff] (!%p2037_p11), %v3403_v0  ;;  %421 = vst [vmem:[#allocation2 + $0x28] sm:$0xff] (!%p2037_p11), %v3403_v0 }
 0x10b   : > { %422 = vst [vmem:[#allocation2 + $0x30] sm:$0xff] (!%p2037_p11), %v3403_v0  ;;  %423 = vst [vmem:[#allocation2 + $0x38] sm:$0xff] (!%p2037_p11), %v3403_v0 }
 0x10c   : > { %424 = vst [vmem:[#allocation2 + $0x40] sm:$0xff] (!%p2037_p11), %v3403_v0  ;;  %425 = vst [vmem:[#allocation2 + $0x48] sm:$0xff] (!%p2037_p11), %v3403_v0 }
 0x10d   : > { %426 = vst [vmem:[#allocation2 + $0x50] sm:$0xff] (!%p2037_p11), %v3403_v0  ;;  %427 = vst [vmem:[#allocation2 + $0x58] sm:$0xff] (!%p2037_p11), %v3403_v0 }
 0x10e   : > { %428 = vst [vmem:[#allocation2 + $0x60] sm:$0xff] (!%p2037_p11), %v3403_v0  ;;  %429 = vst [vmem:[#allocation2 + $0x68] sm:$0xff] (!%p2037_p11), %v3403_v0 }
 0x10f   : > { %430 = vst [vmem:[#allocation2 + $0x70] sm:$0xff] %v3403_v0  ;;  %431 = vst [vmem:[#allocation2 + $0x78] sm:$0xff] %v3403_v0 }
 0x110   : > { %432 = vst [vmem:[#allocation2 + $0x80] sm:$0xff] %v3403_v0  ;;  %433 = vst [vmem:[#allocation2 + $0x88] sm:$0xff] %v3403_v0 }
 0x111   : > { %434 = vst [vmem:[#allocation2 + $0x90] sm:$0xff] %v3403_v0  ;;  %435 = vst [vmem:[#allocation2 + $0x98] sm:$0xff] %v3403_v0 }
 0x112   : > { %436 = vst [vmem:[#allocation2 + $0xa0] sm:$0xff] %v3403_v0  ;;  %437 = vst [vmem:[#allocation2 + $0xa8] sm:$0xff] %v3403_v0 }
 0x113   : > { %438 = vst [vmem:[#allocation2 + $0xb0] sm:$0xff] %v3403_v0  ;;  %439 = vst [vmem:[#allocation2 + $0xb8] sm:$0xff] %v3403_v0 }
 0x114   : > { %440 = vst [vmem:[#allocation2 + $0xc0] sm:$0xff] %v3403_v0  ;;  %441 = vst [vmem:[#allocation2 + $0xc8] sm:$0xff] %v3403_v0 }
 0x115   : > { %442 = vst [vmem:[#allocation2 + $0xd0] sm:$0xff] %v3403_v0  ;;  %443 = vst [vmem:[#allocation2 + $0xd8] sm:$0xff] %v3403_v0 }
 0x116   : > { %444 = vst [vmem:[#allocation2 + $0xe0] sm:$0xff] %v3403_v0  ;;  %445 = vst [vmem:[#allocation2 + $0xe8] sm:$0xff] %v3403_v0 }
 0x117   : > { %446 = vst [vmem:[#allocation2 + $0xf0] sm:$0xff] %v3403_v0  ;;  %447 = vst [vmem:[#allocation2 + $0xf8] sm:$0xff] %v3403_v0 }
 0x118 PF: > { %v2990_v1 = vld [vmem:[%s3855_s27 + $0x40] sm:$0xff]   ;;  %v2992_v3 = vld [vmem:[%s3855_s27 + $0x48] sm:$0xff]   ;;  %v2994_v5 = vld [vmem:[%s3855_s27 + $0x50] sm:$0xff]   ;;  %s4172_s11 = sld [smem:[#allocation24_spill]] }
 0x119   : > { %v2991_v2 = vld [vmem:[%s3855_s27] sm:$0xff]   ;;  %2335 = vmatprep.subr.bf16.mxu0 %v2990_v1  ;;  %2767 = vmatprep.subr.bf16.mxu1 %v2990_v1  ;;  %v2993_v4 = vld [vmem:[%s3855_s27 + $0x8] sm:$0xff]   ;;  %v2995_v6 = vld [vmem:[%s3855_s27 + $0x10] sm:$0xff]  }
 0x11a   : > { %2336 = vmatpush3.bf16.msra.mxu0 %v2991_v2  ;;  %2775 = vmatpush3.bf16.msra.mxu1 %v2991_v2  ;;  %v2996_v7 = vld [vmem:[%s3855_s27 + $0x58] sm:$0xff]   ;;  %v2998_v9 = vld [vmem:[%s3855_s27 + $0x60] sm:$0xff]   ;;  %v3000_v11 = vld [vmem:[%s3855_s27 + $0x68] sm:$0xff]  }
 0x11b   : > { %2337 = vmatprep.subr.bf16.mxu0 %v2992_v3  ;;  %2768 = vmatprep.subr.bf16.mxu1 %v2992_v3  ;;  %v2997_v8 = vld [vmem:[%s3855_s27 + $0x18] sm:$0xff]   ;;  %v2999_v10 = vld [vmem:[%s3855_s27 + $0x20] sm:$0xff]   ;;  %v3001_v14 = vld [vmem:[%s3855_s27 + $0x28] sm:$0xff]  }
 0x11c   : > { %v3008_v12 = vld [vmem:[%s3847_s1 + $0x4] ss:$8 sps:$4 sm:$0xff]   ;;  %v3002_v15 = vld [vmem:[%s3855_s27 + $0x70] sm:$0xff]   ;;  %v3004_v17 = vld [vmem:[%s3855_s27 + $0x78] sm:$0xff]  }
 0x11d   : > { %v3011_v13 = vld [vmem:[%s3847_s1 + $0x84] ss:$8 sps:$4 sm:$0xff]   ;;  %832 = vmatprep.mubr.bf16.mxu0 %v3008_v12  ;;  %v3003_v16 = vld [vmem:[%s3855_s27 + $0x30] sm:$0xff]   ;;  %v3005_v18 = vld [vmem:[%s3855_s27 + $0x38] sm:$0xff]  }
 0x11e   : > { %2338 = vmatpush3.bf16.msra.mxu0 %v2993_v4  ;;  %2776 = vmatpush3.bf16.msra.mxu1 %v2993_v4  ;;  %v3006_v19 = vld [vmem:[%s3847_s1] ss:$8 sps:$4 sm:$0xff]   ;;  %v3012_v21 = vld [vmem:[%s3847_s1 + $0x14] ss:$8 sps:$4 sm:$0xff]   ;;  %v3016_v23 = vld [vmem:[%s3847_s1 + $0x10] ss:$8 sps:$4 sm:$0xff]  }
 0x11f   : > { %2339 = vmatprep.subr.bf16.mxu0 %v2994_v5  ;;  %2769 = vmatprep.subr.bf16.mxu1 %v2994_v5  ;;  %v3009_v20 = vld [vmem:[%s3847_s1 + $0x80] ss:$8 sps:$4 sm:$0xff]   ;;  %v3014_v22 = vld [vmem:[%s3847_s1 + $0x94] ss:$8 sps:$4 sm:$0xff]   ;;  %v3017_v24 = vld [vmem:[%s3847_s1 + $0x90] ss:$8 sps:$4 sm:$0xff]  }
 0x120   : > { %896 = vmatprep.mubr.bf16.mxu1 %v3011_v13  ;;  %v3018_v25 = vld [vmem:[%s3847_s1 + $0x24] ss:$8 sps:$4 sm:$0xff]   ;;  %v3022_v27 = vld [vmem:[%s3847_s1 + $0x20] ss:$8 sps:$4 sm:$0xff]   ;;  %v3024_v29 = vld [vmem:[%s3847_s1 + $0x34] ss:$8 sps:$4 sm:$0xff]  }
 0x121   : > { %v3020_v26 = vld [vmem:[%s3847_s1 + $0xa4] ss:$8 sps:$4 sm:$0xff]   ;;  %v3023_v28 = vld [vmem:[%s3847_s1 + $0xa0] ss:$8 sps:$4 sm:$0xff]   ;;  %v3026_v30 = vld [vmem:[%s3847_s1 + $0xb4] ss:$8 sps:$4 sm:$0xff]  }
 0x122   : > { %2340 = vmatpush3.bf16.msra.mxu0 %v2995_v6  ;;  %2777 = vmatpush3.bf16.msra.mxu1 %v2995_v6  ;;  %v3028_v31 = vld [vmem:[%s3847_s1 + $0x30] ss:$8 sps:$4 sm:$0xff]   ;;  %v3030_v33 = vld [vmem:[%s3847_s1 + $0x44] ss:$8 sps:$4 sm:$0xff]   ;;  %v3034_v35 = vld [vmem:[%s3847_s1 + $0x40] ss:$8 sps:$4 sm:$0xff]  }
 0x123   : > { %2341 = vmatprep.subr.bf16.mxu0 %v2996_v7  ;;  %2770 = vmatprep.subr.bf16.mxu1 %v2996_v7  ;;  %v3029_v32 = vld [vmem:[%s3847_s1 + $0xb0] ss:$8 sps:$4 sm:$0xff]   ;;  %v3032_v34 = vld [vmem:[%s3847_s1 + $0xc4] ss:$8 sps:$4 sm:$0xff]   ;;  %v3035_v36 = vld [vmem:[%s3847_s1 + $0xc0] ss:$8 sps:$4 sm:$0xff]  }
 0x124   : > { %v3036_v37 = vld [vmem:[%s3847_s1 + $0x54] ss:$8 sps:$4 sm:$0xff]   ;;  %v3040_v39 = vld [vmem:[%s3847_s1 + $0x50] ss:$8 sps:$4 sm:$0xff]   ;;  %v3042_v41 = vld [vmem:[%s3847_s1 + $0x64] ss:$8 sps:$4 sm:$0xff]  }
 0x125   : > { %v3038_v38 = vld [vmem:[%s3847_s1 + $0xd4] ss:$8 sps:$4 sm:$0xff]   ;;  %v3041_v40 = vld [vmem:[%s3847_s1 + $0xd0] ss:$8 sps:$4 sm:$0xff]   ;;  %v3044_v42 = vld [vmem:[%s3847_s1 + $0xe4] ss:$8 sps:$4 sm:$0xff]  }
 0x126   : > { %2342 = vmatpush3.bf16.msra.mxu0 %v2997_v8  ;;  %2778 = vmatpush3.bf16.msra.mxu1 %v2997_v8  ;;  %v3046_v43 = vld [vmem:[%s3847_s1 + $0x60] ss:$8 sps:$4 sm:$0xff]   ;;  %v3048_v45 = vld [vmem:[%s3847_s1 + $0x74] ss:$8 sps:$4 sm:$0xff]   ;;  %v3052_v47 = vld [vmem:[%s3847_s1 + $0x70] ss:$8 sps:$4 sm:$0xff]  }
 0x127   : > { %2343 = vmatprep.subr.bf16.mxu0 %v2998_v9  ;;  %2771 = vmatprep.subr.bf16.mxu1 %v2998_v9  ;;  %v3047_v44 = vld [vmem:[%s3847_s1 + $0xe0] ss:$8 sps:$4 sm:$0xff]   ;;  %v3050_v46 = vld [vmem:[%s3847_s1 + $0xf4] ss:$8 sps:$4 sm:$0xff]   ;;  %v3053_v48 = vld [vmem:[%s3847_s1 + $0xf0] ss:$8 sps:$4 sm:$0xff]  }
 0x128   : > { %v448_v51 = vld [vmem:[#allocation2] sm:$0xff]  ;;  %v449_v59 = vld [vmem:[#allocation2 + $0x8] sm:$0xff]  ;;  %v450_v7 = vld [vmem:[#allocation2 + $0x10] sm:$0xff]  ;;  %p2086_p8 = scmp.ne.s32.totalorder %s4172_s11, 1 }
 0x129   : > { %v464_v53 = vld [vmem:[#allocation2 + $0x80] sm:$0xff]  ;;  %v465_v61 = vld [vmem:[#allocation2 + $0x88] sm:$0xff]  ;;  %v466_v9 = vld [vmem:[#allocation2 + $0x90] sm:$0xff] }
 0x12a   : > { %2344 = vmatpush3.bf16.msra.mxu0 %v2999_v10  ;;  %2779 = vmatpush3.bf16.msra.mxu1 %v2999_v10 }
 0x12b   : > { %2345 = vmatprep.subr.bf16.mxu0 %v3000_v11  ;;  %2772 = vmatprep.subr.bf16.mxu1 %v3000_v11 }
 0x12e   : > { %2346 = vmatpush3.bf16.msra.mxu0 %v3001_v14  ;;  %2780 = vmatpush3.bf16.msra.mxu1 %v3001_v14 }
 0x12f   : > { %2347 = vmatprep.subr.bf16.mxu0 %v3002_v15  ;;  %2773 = vmatprep.subr.bf16.mxu1 %v3002_v15  ;;  %v451_v15 = vld [vmem:[#allocation2 + $0x18] sm:$0xff] }
 0x132   : > { %2348 = vmatpush3.bf16.msra.mxu0 %v3003_v16  ;;  %2781 = vmatpush3.bf16.msra.mxu1 %v3003_v16 }
 0x133   : > { %2349 = vmatprep.subr.bf16.mxu0 %v3004_v17  ;;  %2774 = vmatprep.subr.bf16.mxu1 %v3004_v17  ;;  %v467_v17 = vld [vmem:[#allocation2 + $0x98] sm:$0xff] }
 0x136   : > { %2350 = vmatpush3.bf16.msra.mxu0 %v3005_v18  ;;  %2782 = vmatpush3.bf16.msra.mxu1 %v3005_v18 }
 0x139   : > { %833 = vmatmul.mubr.bf16.vlgmr.msra.gmra.mrb[0].mxu0 %v3006_v19  ;;  %897 = vmatmul.mubr.bf16.vlgmr.msra.gmra.mrb[0].mxu1 %v3009_v20 }
 0x13a   : > { %840 = vmatprep.mubr.bf16.mxu0 %v3012_v21  ;;  %904 = vmatprep.mubr.bf16.mxu1 %v3014_v22 }
 0x141   : > { %841 = vmatmul.mubr.bf16.gmra.mrb[4].mxu0 %v3016_v23  ;;  %905 = vmatmul.mubr.bf16.gmra.mrb[4].mxu1 %v3017_v24 }
 0x142   : > { %848 = vmatprep.mubr.bf16.mxu0 %v3018_v25  ;;  %912 = vmatprep.mubr.bf16.mxu1 %v3020_v26 }
 0x149   : > { %849 = vmatmul.mubr.bf16.gmra.mrb[8].mxu0 %v3022_v27  ;;  %913 = vmatmul.mubr.bf16.gmra.mrb[8].mxu1 %v3023_v28  ;;  %v452_v27 = vld [vmem:[#allocation2 + $0x20] sm:$0xff] }
 0x14a   : > { %856 = vmatprep.mubr.bf16.mxu0 %v3024_v29  ;;  %920 = vmatprep.mubr.bf16.mxu1 %v3026_v30  ;;  %v468_v29 = vld [vmem:[#allocation2 + $0xa0] sm:$0xff] }
 0x151   : > { %857 = vmatmul.mubr.bf16.gmra.mrb[12].mxu0 %v3028_v31  ;;  %921 = vmatmul.mubr.bf16.gmra.mrb[12].mxu1 %v3029_v32 }
 0x152   : > { %864 = vmatprep.mubr.bf16.mxu0 %v3030_v33  ;;  %928 = vmatprep.mubr.bf16.mxu1 %v3032_v34 }
 0x159   : > { %865 = vmatmul.mubr.bf16.gmra.mrb[16].mxu0 %v3034_v35  ;;  %929 = vmatmul.mubr.bf16.gmra.mrb[16].mxu1 %v3035_v36  ;;  %v453_v35 = vld [vmem:[#allocation2 + $0x28] sm:$0xff] }
 0x15a   : > { %872 = vmatprep.mubr.bf16.mxu0 %v3036_v37  ;;  %936 = vmatprep.mubr.bf16.mxu1 %v3038_v38  ;;  %v469_v37 = vld [vmem:[#allocation2 + $0xa8] sm:$0xff] }
 0x161   : > { %873 = vmatmul.mubr.bf16.gmra.mrb[20].mxu0 %v3040_v39  ;;  %937 = vmatmul.mubr.bf16.gmra.mrb[20].mxu1 %v3041_v40 }
 0x162   : > { %880 = vmatprep.mubr.bf16.mxu0 %v3042_v41  ;;  %944 = vmatprep.mubr.bf16.mxu1 %v3044_v42 }
 0x169   : > { %881 = vmatmul.mubr.bf16.gmra.mrb[24].mxu0 %v3046_v43  ;;  %945 = vmatmul.mubr.bf16.gmra.mrb[24].mxu1 %v3047_v44 }
 0x16a   : > { %888 = vmatprep.mubr.bf16.mxu0 %v3048_v45  ;;  %952 = vmatprep.mubr.bf16.mxu1 %v3050_v46 }
 0x171   : > { %889 = vmatmul.mubr.bf16.gmra.mrb[28].mxu0 %v3052_v47  ;;  %953 = vmatmul.mubr.bf16.gmra.mrb[28].mxu1 %v3053_v48  ;;  %v454_v47 = vld [vmem:[#allocation2 + $0x30] sm:$0xff] }
 0x20c   : > { %v2351_v49 = vpop.f32.mrb[0].mxu0  ;;  %v2399_v50 = vpop.f32.mrb[0].mxu1 }
 0x20d   : > { %v2352_v52 = vpop.f32.mrb[1].mxu0  ;;  %v2400_v54 = vpop.f32.mrb[1].mxu1 }
 0x20e   : > { %v2353_v55 = vadd.f32 %v2352_v52, %v2351_v49  ;;  %v2401_v56 = vadd.f32 %v2400_v54, %v2399_v50  ;;  %v2354_v57 = vpop.f32.mrb[2].mxu0  ;;  %v2402_v58 = vpop.f32.mrb[2].mxu1  ;;  %v470_v49 = vld [vmem:[#allocation2 + $0xb0] sm:$0xff] }
 0x20f   : > { %v2355_v60 = vpop.f32.mrb[3].mxu0  ;;  %v2403_v62 = vpop.f32.mrb[3].mxu1 }
 0x210   : > { %v961_v63 = vadd.f32 %v2353_v55, %v448_v51  ;;  %v977_v0 = vadd.f32 %v2401_v56, %v464_v53  ;;  %v2356_v1 = vadd.f32 %v2355_v60, %v2354_v57  ;;  %v2404_v2 = vadd.f32 %v2403_v62, %v2402_v58  ;;  %v455_v55 = vld [vmem:[#allocation2 + $0x38] sm:$0xff] }
 0x211   : > { %v471_v57 = vld [vmem:[#allocation2 + $0xb8] sm:$0xff] }
 0x212   : > { %993 = vst [vmem:[#allocation2] sm:$0xff] %v961_v63  ;;  %1009 = vst [vmem:[#allocation2 + $0x80] sm:$0xff] %v977_v0  ;;  %v962_v3 = vadd.f32 %v2356_v1, %v449_v59  ;;  %v978_v4 = vadd.f32 %v2404_v2, %v465_v61 }
 0x214   : > { %994 = vst [vmem:[#allocation2 + $0x8] sm:$0xff] %v962_v3  ;;  %1010 = vst [vmem:[#allocation2 + $0x88] sm:$0xff] %v978_v4  ;;  %v2357_v5 = vpop.f32.mrb[4].mxu0  ;;  %v2405_v6 = vpop.f32.mrb[4].mxu1  ;;  %v456_v3 = vld [vmem:[#allocation2 + $0x40] sm:$0xff] }
 0x215   : > { %v2358_v8 = vpop.f32.mrb[5].mxu0  ;;  %v2406_v10 = vpop.f32.mrb[5].mxu1 }
 0x216   : > { %v2359_v11 = vadd.f32 %v2358_v8, %v2357_v5  ;;  %v2407_v12 = vadd.f32 %v2406_v10, %v2405_v6  ;;  %v2360_v13 = vpop.f32.mrb[6].mxu0  ;;  %v2408_v14 = vpop.f32.mrb[6].mxu1  ;;  %v472_v5 = vld [vmem:[#allocation2 + $0xc0] sm:$0xff] }
 0x217   : > { %v2361_v16 = vpop.f32.mrb[7].mxu0  ;;  %v2409_v18 = vpop.f32.mrb[7].mxu1 }
 0x218   : > { %v963_v19 = vadd.f32 %v2359_v11, %v450_v7  ;;  %v979_v20 = vadd.f32 %v2407_v12, %v466_v9  ;;  %v2362_v21 = vadd.f32 %v2361_v16, %v2360_v13  ;;  %v2410_v22 = vadd.f32 %v2409_v18, %v2408_v14  ;;  %v457_v11 = vld [vmem:[#allocation2 + $0x48] sm:$0xff] }
 0x219   : > { %v473_v13 = vld [vmem:[#allocation2 + $0xc8] sm:$0xff] }
 0x21a   : > { %995 = vst [vmem:[#allocation2 + $0x10] sm:$0xff] %v963_v19  ;;  %1011 = vst [vmem:[#allocation2 + $0x90] sm:$0xff] %v979_v20  ;;  %v964_v23 = vadd.f32 %v2362_v21, %v451_v15  ;;  %v980_v24 = vadd.f32 %v2410_v22, %v467_v17 }
 0x21c   : > { %996 = vst [vmem:[#allocation2 + $0x18] sm:$0xff] %v964_v23  ;;  %1012 = vst [vmem:[#allocation2 + $0x98] sm:$0xff] %v980_v24  ;;  %v2363_v25 = vpop.f32.mrb[8].mxu0  ;;  %v2411_v26 = vpop.f32.mrb[8].mxu1  ;;  %v458_v23 = vld [vmem:[#allocation2 + $0x50] sm:$0xff] }
 0x21d   : > { %v2364_v28 = vpop.f32.mrb[9].mxu0  ;;  %v2412_v30 = vpop.f32.mrb[9].mxu1 }
 0x21e   : > { %v2365_v31 = vadd.f32 %v2364_v28, %v2363_v25  ;;  %v2413_v32 = vadd.f32 %v2412_v30, %v2411_v26  ;;  %v2366_v33 = vpop.f32.mrb[10].mxu0  ;;  %v2414_v34 = vpop.f32.mrb[10].mxu1  ;;  %v474_v25 = vld [vmem:[#allocation2 + $0xd0] sm:$0xff] }
 0x21f   : > { %v2367_v36 = vpop.f32.mrb[11].mxu0  ;;  %v2415_v38 = vpop.f32.mrb[11].mxu1 }
 0x220   : > { %v965_v39 = vadd.f32 %v2365_v31, %v452_v27  ;;  %v981_v40 = vadd.f32 %v2413_v32, %v468_v29  ;;  %v2368_v41 = vadd.f32 %v2367_v36, %v2366_v33  ;;  %v2416_v42 = vadd.f32 %v2415_v38, %v2414_v34  ;;  %v459_v31 = vld [vmem:[#allocation2 + $0x58] sm:$0xff] }
 0x221   : > { %v475_v33 = vld [vmem:[#allocation2 + $0xd8] sm:$0xff] }
 0x222   : > { %997 = vst [vmem:[#allocation2 + $0x20] sm:$0xff] %v965_v39  ;;  %1013 = vst [vmem:[#allocation2 + $0xa0] sm:$0xff] %v981_v40  ;;  %v966_v43 = vadd.f32 %v2368_v41, %v453_v35  ;;  %v982_v44 = vadd.f32 %v2416_v42, %v469_v37 }
 0x224   : > { %998 = vst [vmem:[#allocation2 + $0x28] sm:$0xff] %v966_v43  ;;  %1014 = vst [vmem:[#allocation2 + $0xa8] sm:$0xff] %v982_v44  ;;  %v2369_v45 = vpop.f32.mrb[12].mxu0  ;;  %v2417_v46 = vpop.f32.mrb[12].mxu1  ;;  %v460_v43 = vld [vmem:[#allocation2 + $0x60] sm:$0xff] }
 0x225   : > { %v2370_v48 = vpop.f32.mrb[13].mxu0  ;;  %v2418_v50 = vpop.f32.mrb[13].mxu1 }
 0x226   : > { %v2371_v51 = vadd.f32 %v2370_v48, %v2369_v45  ;;  %v2419_v52 = vadd.f32 %v2418_v50, %v2417_v46  ;;  %v2372_v53 = vpop.f32.mrb[14].mxu0  ;;  %v2420_v54 = vpop.f32.mrb[14].mxu1  ;;  %v476_v45 = vld [vmem:[#allocation2 + $0xe0] sm:$0xff] }
 0x227   : > { %v2373_v56 = vpop.f32.mrb[15].mxu0  ;;  %v2421_v58 = vpop.f32.mrb[15].mxu1 }
 0x228   : > { %v967_v59 = vadd.f32 %v2371_v51, %v454_v47  ;;  %v983_v60 = vadd.f32 %v2419_v52, %v470_v49  ;;  %v2374_v61 = vadd.f32 %v2373_v56, %v2372_v53  ;;  %v2422_v62 = vadd.f32 %v2421_v58, %v2420_v54  ;;  %v461_v51 = vld [vmem:[#allocation2 + $0x68] sm:$0xff] }
 0x229   : > { %v477_v53 = vld [vmem:[#allocation2 + $0xe8] sm:$0xff] }
 0x22a   : > { %999 = vst [vmem:[#allocation2 + $0x30] sm:$0xff] %v967_v59  ;;  %1015 = vst [vmem:[#allocation2 + $0xb0] sm:$0xff] %v983_v60  ;;  %v968_v63 = vadd.f32 %v2374_v61, %v455_v55  ;;  %v984_v0 = vadd.f32 %v2422_v62, %v471_v57 }
 0x22c   : > { %1000 = vst [vmem:[#allocation2 + $0x38] sm:$0xff] %v968_v63  ;;  %1016 = vst [vmem:[#allocation2 + $0xb8] sm:$0xff] %v984_v0  ;;  %v2375_v1 = vpop.f32.mrb[16].mxu0  ;;  %v2423_v2 = vpop.f32.mrb[16].mxu1  ;;  %v462_v63 = vld [vmem:[#allocation2 + $0x70] sm:$0xff] }
 0x22d   : > { %v2376_v4 = vpop.f32.mrb[17].mxu0  ;;  %v2424_v6 = vpop.f32.mrb[17].mxu1 }
 0x22e   : > { %v2377_v7 = vadd.f32 %v2376_v4, %v2375_v1  ;;  %v2425_v8 = vadd.f32 %v2424_v6, %v2423_v2  ;;  %v2378_v9 = vpop.f32.mrb[18].mxu0  ;;  %v2426_v10 = vpop.f32.mrb[18].mxu1  ;;  %v478_v1 = vld [vmem:[#allocation2 + $0xf0] sm:$0xff] }
 0x22f   : > { %v2379_v12 = vpop.f32.mrb[19].mxu0  ;;  %v2427_v14 = vpop.f32.mrb[19].mxu1 }
 0x230   : > { %v969_v15 = vadd.f32 %v2377_v7, %v456_v3  ;;  %v985_v16 = vadd.f32 %v2425_v8, %v472_v5  ;;  %v2380_v17 = vadd.f32 %v2379_v12, %v2378_v9  ;;  %v2428_v18 = vadd.f32 %v2427_v14, %v2426_v10  ;;  %v463_v7 = vld [vmem:[#allocation2 + $0x78] sm:$0xff] }
 0x231   : > { %v479_v9 = vld [vmem:[#allocation2 + $0xf8] sm:$0xff] }
 0x232   : > { %1001 = vst [vmem:[#allocation2 + $0x40] sm:$0xff] %v969_v15  ;;  %1017 = vst [vmem:[#allocation2 + $0xc0] sm:$0xff] %v985_v16  ;;  %v970_v19 = vadd.f32 %v2380_v17, %v457_v11  ;;  %v986_v20 = vadd.f32 %v2428_v18, %v473_v13  ;;  %v1141_v17 = vld [vmem:[#allocation11] sm:$0xff] (!%p2086_p8)  ;;  %v1142_v18 = vld [vmem:[#allocation11 + $0x8] sm:$0xff] (!%p2086_p8) }
 0x234   : > { %1002 = vst [vmem:[#allocation2 + $0x48] sm:$0xff] %v970_v19  ;;  %1018 = vst [vmem:[#allocation2 + $0xc8] sm:$0xff] %v986_v20  ;;  %v2381_v21 = vpop.f32.mrb[20].mxu0  ;;  %v2429_v22 = vpop.f32.mrb[20].mxu1  ;;  %v1061_v19 = vld [vmem:[#allocation9] sm:$0xff] (!%p2086_p8)  ;;  %v2703_v20 = vpack.c.bf16 (!%p2086_p8), %v1142_v18, %v1141_v17  ;;  %v1034_v17 = vld [vmem:[#allocation2 + $0x28] sm:$0xff] (!%p2086_p8) }
 0x235   : > { %v2382_v24 = vpop.f32.mrb[21].mxu0  ;;  %v2430_v26 = vpop.f32.mrb[21].mxu1  ;;  %v2308_v18 = vld [vmem:[%s3864_s7 + $0x20] sm:$0xff] (!%p2086_p8)  }
 0x236   : > { %v2383_v27 = vadd.f32 %v2382_v24, %v2381_v21  ;;  %v2431_v28 = vadd.f32 %v2430_v26, %v2429_v22  ;;  %v2384_v29 = vpop.f32.mrb[22].mxu0  ;;  %v2432_v30 = vpop.f32.mrb[22].mxu1  ;;  %v1062_v21 = vld [vmem:[#allocation9 + $0x8] sm:$0xff] (!%p2086_p8)  ;;  %v1143_v22 = vld [vmem:[#allocation11 + $0x10] sm:$0xff] (!%p2086_p8)  ;;  %2704 = vmatprep.subr.bf16.mxu1 (!%p2086_p8), %v2703_v20 }
 0x237   : > { %v2385_v32 = vpop.f32.mrb[23].mxu0  ;;  %v2433_v34 = vpop.f32.mrb[23].mxu1  ;;  %v2735_v24 = vpack.c.bf16 (!%p2086_p8), %v1062_v21, %v1061_v19  ;;  %v1063_v26 = vld [vmem:[#allocation9 + $0x10] sm:$0xff] (!%p2086_p8)  ;;  %2706 = vmatpush3.bf16.msra.mxu1 (!%p2086_p8), %v2703_v20  ;;  %v2179_v21 = vunpack.c.l.bf16 (!%p2086_p8), %v2308_v18 }
 0x238   : > { %v971_v35 = vadd.f32 %v2383_v27, %v458_v23  ;;  %v987_v36 = vadd.f32 %v2431_v28, %v474_v25  ;;  %v2386_v37 = vadd.f32 %v2385_v32, %v2384_v29  ;;  %v2434_v38 = vadd.f32 %v2433_v34, %v2432_v30  ;;  %v1144_v23 = vld [vmem:[#allocation11 + $0x18] sm:$0xff] (!%p2086_p8)  ;;  %v1145_v28 = vld [vmem:[#allocation11 + $0x20] sm:$0xff] (!%p2086_p8)  ;;  %v1146_v30 = vld [vmem:[#allocation11 + $0x28] sm:$0xff] (!%p2086_p8) }
 0x239   : > { %v2707_v25 = vpack.c.bf16 (!%p2086_p8), %v1144_v23, %v1143_v22  ;;  %v1064_v27 = vld [vmem:[#allocation9 + $0x18] sm:$0xff] (!%p2086_p8)  ;;  %v1066_v32 = vld [vmem:[#allocation9 + $0x28] sm:$0xff] (!%p2086_p8)  ;;  %2736 = vmatprep.subr.bf16.mxu0 (!%p2086_p8), %v2735_v24  ;;  %v1035_v19 = vld [vmem:[#allocation2 + $0x30] sm:$0xff] (!%p2086_p8) }
 0x23a   : > { %1003 = vst [vmem:[#allocation2 + $0x50] sm:$0xff] %v971_v35  ;;  %1019 = vst [vmem:[#allocation2 + $0xd0] sm:$0xff] %v987_v36  ;;  %v972_v39 = vadd.f32 %v2386_v37, %v459_v31  ;;  %v988_v40 = vadd.f32 %v2434_v38, %v475_v33  ;;  %v2739_v29 = vpack.c.bf16 (!%p2086_p8), %v1064_v27, %v1063_v26  ;;  %v1065_v31 = vld [vmem:[#allocation9 + $0x20] sm:$0xff] (!%p2086_p8)  ;;  %2738 = vmatpush3.bf16.msra.mxu0 (!%p2086_p8), %v2735_v24  ;;  %v1147_v35 = vld [vmem:[#allocation11 + $0x30] sm:$0xff] (!%p2086_p8) }
 0x23b   : > { %2708 = vmatprep.subr.bf16.mxu1 (!%p2086_p8), %v2707_v25  ;;  %v2711_v33 = vpack.c.bf16 (!%p2086_p8), %v1146_v30, %v1145_v28  ;;  %v2743_v34 = vpack.c.bf16 (!%p2086_p8), %v1066_v32, %v1065_v31  ;;  %v1148_v36 = vld [vmem:[#allocation11 + $0x38] sm:$0xff] (!%p2086_p8)  ;;  %v1067_v37 = vld [vmem:[#allocation9 + $0x30] sm:$0xff] (!%p2086_p8)  ;;  %v2309_v23 = vld [vmem:[%s3864_s7 + $0x28] sm:$0xff] (!%p2086_p8)  }
 0x23c   : > { %1004 = vst [vmem:[#allocation2 + $0x58] sm:$0xff] %v972_v39  ;;  %1020 = vst [vmem:[#allocation2 + $0xd8] sm:$0xff] %v988_v40  ;;  %v2387_v41 = vpop.f32.mrb[24].mxu0  ;;  %v2435_v42 = vpop.f32.mrb[24].mxu1  ;;  %2740 = vmatprep.subr.bf16.mxu0 (!%p2086_p8), %v2739_v29  ;;  %v1068_v38 = vld [vmem:[#allocation9 + $0x38] sm:$0xff] (!%p2086_p8)  ;;  %2710 = vmatpush3.bf16.msra.mxu1 (!%p2086_p8), %v2707_v25  ;;  %v2715_v39 = vpack.c.bf16 (!%p2086_p8), %v1148_v36, %v1147_v35  ;;  %v1037_v24 = vld [vmem:[#allocation2 + $0x40] sm:$0xff] (!%p2086_p8)  ;;  %v2180_v25 = vunpack.c.h.bf16 (!%p2086_p8), %v2308_v18  ;;  %v2183_v26 = vunpack.c.l.bf16 (!%p2086_p8), %v2309_v23  ;;  %v2184_v30 = vunpack.c.h.bf16 (!%p2086_p8), %v2309_v23 }
 0x23d   : > { %v2388_v44 = vpop.f32.mrb[25].mxu0  ;;  %v2436_v46 = vpop.f32.mrb[25].mxu1  ;;  %2712 = vmatprep.subr.bf16.mxu1 (!%p2086_p8), %v2711_v33  ;;  %v2747_v40 = vpack.c.bf16 (!%p2086_p8), %v1068_v38, %v1067_v37  ;;  %v1036_v22 = vld [vmem:[#allocation2 + $0x38] sm:$0xff] (!%p2086_p8)  ;;  %v1038_v27 = vld [vmem:[#allocation2 + $0x48] sm:$0xff] (!%p2086_p8)  ;;  %v2310_v28 = vld [vmem:[%s3864_s7 + $0x30] sm:$0xff] (!%p2086_p8)  }
 0x23e   : > { %v2389_v47 = vadd.f32 %v2388_v44, %v2387_v41  ;;  %v2437_v48 = vadd.f32 %v2436_v46, %v2435_v42  ;;  %v2390_v49 = vpop.f32.mrb[26].mxu0  ;;  %v2438_v50 = vpop.f32.mrb[26].mxu1  ;;  %2742 = vmatpush3.bf16.msra.mxu0 (!%p2086_p8), %v2739_v29  ;;  %v1149_v41 = vld [vmem:[#allocation11 + $0x40] sm:$0xff] (!%p2086_p8)  ;;  %v1150_v42 = vld [vmem:[#allocation11 + $0x48] sm:$0xff] (!%p2086_p8)  ;;  %v2187_v31 = vunpack.c.l.bf16 (!%p2086_p8), %v2310_v28  ;;  %v2188_v35 = vunpack.c.h.bf16 (!%p2086_p8), %v2310_v28 }
 0x23f   : > { %v2391_v52 = vpop.f32.mrb[27].mxu0  ;;  %v2439_v54 = vpop.f32.mrb[27].mxu1  ;;  %2744 = vmatprep.subr.bf16.mxu0 (!%p2086_p8), %v2743_v34  ;;  %v1069_v44 = vld [vmem:[#allocation9 + $0x40] sm:$0xff] (!%p2086_p8) }
 0x240   : > { %v973_v55 = vadd.f32 %v2389_v47, %v460_v43  ;;  %v989_v56 = vadd.f32 %v2437_v48, %v476_v45  ;;  %v2392_v57 = vadd.f32 %v2391_v52, %v2390_v49  ;;  %v2440_v58 = vadd.f32 %v2439_v54, %v2438_v50  ;;  %v2162_v43 = vld [vmem:[%s3864_s7] sm:$0xff] (!%p2086_p8)   ;;  %v1070_v45 = vld [vmem:[#allocation9 + $0x48] sm:$0xff] (!%p2086_p8)  ;;  %2714 = vmatpush3.bf16.msra.mxu1 (!%p2086_p8), %v2711_v33  ;;  %v1151_v50 = vld [vmem:[#allocation11 + $0x50] sm:$0xff] (!%p2086_p8) }
 0x241   : > { %v2163_v46 = vunpack.c.l.bf16 (!%p2086_p8), %v2162_v43  ;;  %v1029_v47 = vld [vmem:[#allocation2] sm:$0xff] (!%p2086_p8)  ;;  %2716 = vmatprep.subr.bf16.mxu1 (!%p2086_p8), %v2715_v39  ;;  %v2719_v48 = vpack.c.bf16 (!%p2086_p8), %v1150_v42, %v1149_v41  ;;  %v2751_v49 = vpack.c.bf16 (!%p2086_p8), %v1070_v45, %v1069_v44  ;;  %v1071_v52 = vld [vmem:[#allocation9 + $0x50] sm:$0xff] (!%p2086_p8)  ;;  %v2311_v33 = vld [vmem:[%s3864_s7 + $0x38] sm:$0xff] (!%p2086_p8)  }
 0x242   : > { %1005 = vst [vmem:[#allocation2 + $0x60] sm:$0xff] %v973_v55  ;;  %1021 = vst [vmem:[#allocation2 + $0xe0] sm:$0xff] %v989_v56  ;;  %v974_v59 = vadd.f32 %v2392_v57, %v461_v51  ;;  %v990_v60 = vadd.f32 %v2440_v58, %v477_v53  ;;  %2655 = vmatprep.mubr.f32.mxu0 (!%p2086_p8), %v1029_v47  ;;  %2746 = vmatpush3.bf16.msra.mxu0 (!%p2086_p8), %v2743_v34  ;;  %v1152_v51 = vld [vmem:[#allocation11 + $0x58] sm:$0xff] (!%p2086_p8)  ;;  %v1153_v56 = vld [vmem:[#allocation11 + $0x60] sm:$0xff] (!%p2086_p8)  ;;  %v2191_v36 = vunpack.c.l.bf16 (!%p2086_p8), %v2311_v33 }
 0x243   : > { %2748 = vmatprep.subr.bf16.mxu0 (!%p2086_p8), %v2747_v40  ;;  %2575 = vmatprep.mubr.f32.mxu1 (!%p2086_p8), %v2163_v46  ;;  %v1072_v53 = vld [vmem:[#allocation9 + $0x58] sm:$0xff] (!%p2086_p8)  ;;  %v2723_v54 = vpack.c.bf16 (!%p2086_p8), %v1152_v51, %v1151_v50  ;;  %v1154_v57 = vld [vmem:[#allocation11 + $0x68] sm:$0xff] (!%p2086_p8)  ;;  %v1073_v58 = vld [vmem:[#allocation9 + $0x60] sm:$0xff] (!%p2086_p8) }
 0x244   : > { %1006 = vst [vmem:[#allocation2 + $0x68] sm:$0xff] %v974_v59  ;;  %1022 = vst [vmem:[#allocation2 + $0xe8] sm:$0xff] %v990_v60  ;;  %v2393_v61 = vpop.f32.mrb[28].mxu0  ;;  %v2441_v62 = vpop.f32.mrb[28].mxu1  ;;  %2718 = vmatpush3.bf16.msra.mxu1 (!%p2086_p8), %v2715_v39  ;;  %v2755_v55 = vpack.c.bf16 (!%p2086_p8), %v1072_v53, %v1071_v52  ;;  %v1074_v59 = vld [vmem:[#allocation9 + $0x68] sm:$0xff] (!%p2086_p8)  ;;  %v2727_v60 = vpack.c.bf16 (!%p2086_p8), %v1154_v57, %v1153_v56  ;;  %v1039_v29 = vld [vmem:[#allocation2 + $0x50] sm:$0xff] (!%p2086_p8) }
 0x245   : > { %v2394_v0 = vpop.f32.mrb[29].mxu0  ;;  %v2442_v2 = vpop.f32.mrb[29].mxu1  ;;  %2720 = vmatprep.subr.bf16.mxu1 (!%p2086_p8), %v2719_v48  ;;  %v1040_v32 = vld [vmem:[#allocation2 + $0x58] sm:$0xff] (!%p2086_p8)  ;;  %v2312_v38 = vld [vmem:[%s3864_s7 + $0x40] sm:$0xff] (!%p2086_p8)   ;;  %v1046_v47 = vld [vmem:[#allocation2 + $0x88] sm:$0xff] (!%p2086_p8) }
 0x246   : > { %v2395_v3 = vadd.f32 %v2394_v0, %v2393_v61  ;;  %v2443_v4 = vadd.f32 %v2442_v2, %v2441_v62  ;;  %v2396_v5 = vpop.f32.mrb[30].mxu0  ;;  %v2444_v6 = vpop.f32.mrb[30].mxu1  ;;  %1028 = sbr.rel (%p2086_p8) target bundleno = 883 (0x373), region = 76  ;;  %2750 = vmatpush3.bf16.msra.mxu0 (!%p2086_p8), %v2747_v40  ;;  %v2759_v61 = vpack.c.bf16 (!%p2086_p8), %v1074_v59, %v1073_v58  ;;  %v1155_v62 = vld [vmem:[#allocation11 + $0x70] sm:$0xff] (!%p2086_p8)  ;;  %v2192_v40 = vunpack.c.h.bf16 (!%p2086_p8), %v2311_v33  ;;  %v1045_v44 = vld [vmem:[#allocation2 + $0x80] sm:$0xff] (!%p2086_p8)  ;;  %v1048_v52 = vld [vmem:[#allocation2 + $0x98] sm:$0xff] (!%p2086_p8) }
 0x247   : > { %v2397_v8 = vpop.f32.mrb[31].mxu0  ;;  %v2445_v10 = vpop.f32.mrb[31].mxu1  ;;  %2752 = vmatprep.subr.bf16.mxu0 (!%p2086_p8), %v2751_v49  ;;  %v1075_v0 = vld [vmem:[#allocation9 + $0x70] sm:$0xff] (!%p2086_p8)  ;;  %v2195_v41 = vunpack.c.l.bf16 (!%p2086_p8), %v2312_v38  ;;  %v2196_v45 = vunpack.c.h.bf16 (!%p2086_p8), %v2312_v38  ;;  %v2315_v53 = vld [vmem:[%s3864_s7 + $0x58] sm:$0xff] (!%p2086_p8)   ;;  %v1050_v57 = vld [vmem:[#allocation2 + $0xa8] sm:$0xff] (!%p2086_p8) }
 0x248   : > { %v975_v11 = vadd.f32 %v2395_v3, %v462_v63  ;;  %v991_v12 = vadd.f32 %v2443_v4, %v478_v1  ;;  %v2398_v13 = vadd.f32 %v2397_v8, %v2396_v5  ;;  %v2446_v14 = vadd.f32 %v2445_v10, %v2444_v6  ;;  %2722 = vmatpush3.bf16.msra.mxu1 (!%p2086_p8), %v2719_v48  ;;  %v1156_v63 = vld [vmem:[#allocation11 + $0x78] sm:$0xff] (!%p2086_p8)  ;;  %v2305_v4 = vld [vmem:[%s3864_s7 + $0x8] sm:$0xff] (!%p2086_p8)   ;;  %v2306_v8 = vld [vmem:[%s3864_s7 + $0x10] sm:$0xff] (!%p2086_p8)  }
 0x249   : > { %2724 = vmatprep.subr.bf16.mxu1 (!%p2086_p8), %v2723_v54  ;;  %v1076_v1 = vld [vmem:[#allocation9 + $0x78] sm:$0xff] (!%p2086_p8)  ;;  %v2731_v2 = vpack.c.bf16 (!%p2086_p8), %v1156_v63, %v1155_v62  ;;  %v2164_v5 = vunpack.c.h.bf16 (!%p2086_p8), %v2162_v43  ;;  %v2167_v6 = vunpack.c.l.bf16 (!%p2086_p8), %v2305_v4  ;;  %v2168_v10 = vunpack.c.h.bf16 (!%p2086_p8), %v2305_v4  ;;  %v1041_v34 = vld [vmem:[#allocation2 + $0x60] sm:$0xff] (!%p2086_p8)  ;;  %v2313_v43 = vld [vmem:[%s3864_s7 + $0x48] sm:$0xff] (!%p2086_p8)  }
 0x24a   : > { %1007 = vst [vmem:[#allocation2 + $0x70] sm:$0xff] %v975_v11  ;;  %1023 = vst [vmem:[#allocation2 + $0xf0] sm:$0xff] %v991_v12  ;;  %v976_v15 = vadd.f32 %v2398_v13, %v463_v7  ;;  %v992_v16 = vadd.f32 %v2446_v14, %v479_v9  ;;  %2754 = vmatpush3.bf16.msra.mxu0 (!%p2086_p8), %v2751_v49  ;;  %v2763_v3 = vpack.c.bf16 (!%p2086_p8), %v1076_v1, %v1075_v0  ;;  %v1030_v7 = vld [vmem:[#allocation2 + $0x8] sm:$0xff] (!%p2086_p8)  ;;  %v1031_v9 = vld [vmem:[#allocation2 + $0x10] sm:$0xff] (!%p2086_p8) }
 0x24b   : > { %2756 = vmatprep.subr.bf16.mxu0 (!%p2086_p8), %v2755_v55  ;;  %v2171_v11 = vunpack.c.l.bf16 (!%p2086_p8), %v2306_v8  ;;  %v1032_v12 = vld [vmem:[#allocation2 + $0x18] sm:$0xff] (!%p2086_p8)  ;;  %v1033_v14 = vld [vmem:[#allocation2 + $0x20] sm:$0xff] (!%p2086_p8)  ;;  %v1042_v37 = vld [vmem:[#allocation2 + $0x68] sm:$0xff] (!%p2086_p8)  ;;  %v2199_v46 = vunpack.c.l.bf16 (!%p2086_p8), %v2313_v43  ;;  %v2200_v50 = vunpack.c.h.bf16 (!%p2086_p8), %v2313_v43  ;;  %v2207_v56 = vunpack.c.l.bf16 (!%p2086_p8), %v2315_v53 }
 0x24c   : > { %1008 = vst [vmem:[#allocation2 + $0x78] sm:$0xff] %v976_v15  ;;  %1024 = vst [vmem:[#allocation2 + $0xf8] sm:$0xff] %v992_v16  ;;  %2726 = vmatpush3.bf16.msra.mxu1 (!%p2086_p8), %v2723_v54  ;;  %v2307_v13 = vld [vmem:[%s3864_s7 + $0x18] sm:$0xff] (!%p2086_p8)   ;;  %v2172_v15 = vunpack.c.h.bf16 (!%p2086_p8), %v2306_v8  ;;  %v2314_v48 = vld [vmem:[%s3864_s7 + $0x50] sm:$0xff] (!%p2086_p8)  }
 0x24d   : > { %2728 = vmatprep.subr.bf16.mxu1 %v2727_v60  ;;  %v2175_v16 = vunpack.c.l.bf16 %v2307_v13  ;;  %v2176_v20 = vunpack.c.h.bf16 %v2307_v13  ;;  %v1047_v49 = vld [vmem:[#allocation2 + $0x90] sm:$0xff]  ;;  %v2203_v51 = vunpack.c.l.bf16 %v2314_v48  ;;  %v1049_v54 = vld [vmem:[#allocation2 + $0xa0] sm:$0xff]  ;;  %v1052_v62 = vld [vmem:[#allocation2 + $0xb8] sm:$0xff] }
 0x24e   : > { %2758 = vmatpush3.bf16.msra.mxu0 %v2755_v55  ;;  %v2204_v55 = vunpack.c.h.bf16 %v2314_v48  ;;  %v2316_v58 = vld [vmem:[%s3864_s7 + $0x60] sm:$0xff]   ;;  %v1051_v59 = vld [vmem:[#allocation2 + $0xb0] sm:$0xff]  ;;  %v2317_v63 = vld [vmem:[%s3864_s7 + $0x68] sm:$0xff]  }
 0x24f   : > { %2760 = vmatprep.subr.bf16.mxu0 %v2759_v61  ;;  %v1053_v0 = vld [vmem:[#allocation2 + $0xc0] sm:$0xff]  ;;  %v2212_v1 = vunpack.c.h.bf16 %v2316_v58  ;;  %v2318_v4 = vld [vmem:[%s3864_s7 + $0x70] sm:$0xff]   ;;  %v1056_v8 = vld [vmem:[#allocation2 + $0xd8] sm:$0xff] }
 0x250   : > { %2730 = vmatpush3.bf16.msra.mxu1 %v2727_v60  ;;  %v2208_v60 = vunpack.c.h.bf16 %v2315_v53  ;;  %v1058_v13 = vld [vmem:[#allocation2 + $0xe8] sm:$0xff] }
 0x251   : > { %2732 = vmatprep.subr.bf16.mxu1 %v2731_v2  ;;  %v1043_v39 = vld [vmem:[#allocation2 + $0x70] sm:$0xff] }
 0x252   : > { %2762 = vmatpush3.bf16.msra.mxu0 %v2759_v61  ;;  %v2211_v61 = vunpack.c.l.bf16 %v2316_v58 }
 0x253   : > { %2764 = vmatprep.subr.bf16.mxu0 %v2763_v3  ;;  %v1044_v42 = vld [vmem:[#allocation2 + $0x78] sm:$0xff] }
 0x254   : > { %2734 = vmatpush3.bf16.msra.mxu1 %v2731_v2  ;;  %v2215_v2 = vunpack.c.l.bf16 %v2317_v63 }
 0x256   : > { %2766 = vmatpush3.bf16.msra.mxu0 %v2763_v3  ;;  %v1054_v3 = vld [vmem:[#allocation2 + $0xc8] sm:$0xff] }
 0x257   : > { %2576 = vmatmul.mubr.f32.vlgmr.msra.gmra.mrb[0].mxu1 %v2164_v5  ;;  %v1055_v5 = vld [vmem:[#allocation2 + $0xd0] sm:$0xff] }
 0x258   : > { %2578 = vmatprep.mubr.f32.mxu1 %v2167_v6  ;;  %v2216_v6 = vunpack.c.h.bf16 %v2317_v63 }
 0x259   : > { %2656 = vmatmul.mubr.f32.vlgmr.msra.gmra.mrb[0].mxu0 %v1030_v7  ;;  %v2219_v7 = vunpack.c.l.bf16 %v2318_v4 }
 0x25a   : > { %2658 = vmatprep.mubr.f32.mxu0 %v1031_v9  ;;  %v2319_v9 = vld [vmem:[%s3864_s7 + $0x78] sm:$0xff]  }
 0x25b   : > { %2579 = vmatmul.mubr.f32.gmra.mrb[2].mxu1 %v2168_v10  ;;  %v1057_v10 = vld [vmem:[#allocation2 + $0xe0] sm:$0xff] }
 0x25c   : > { %2581 = vmatprep.mubr.f32.mxu1 %v2171_v11  ;;  %v2220_v11 = vunpack.c.h.bf16 %v2318_v4 }
 0x25d   : > { %2659 = vmatmul.mubr.f32.gmra.mrb[2].mxu0 %v1032_v12  ;;  %v2223_v12 = vunpack.c.l.bf16 %v2319_v9 }
 0x25e   : > { %2661 = vmatprep.mubr.f32.mxu0 %v1033_v14  ;;  %v1059_v14 = vld [vmem:[#allocation2 + $0xf0] sm:$0xff] }
 0x25f   : > { %2582 = vmatmul.mubr.f32.gmra.mrb[4].mxu1 %v2172_v15  ;;  %v2224_v15 = vunpack.c.h.bf16 %v2319_v9 }
 0x260   : > { %2584 = vmatprep.mubr.f32.mxu1 %v2175_v16  ;;  %v1060_v16 = vld [vmem:[#allocation2 + $0xf8] sm:$0xff] }
 0x261   : > { %2662 = vmatmul.mubr.f32.gmra.mrb[4].mxu0 %v1034_v17 }
 0x262   : > { %2664 = vmatprep.mubr.f32.mxu0 %v1035_v19  ;;  %v3946_v19 = vld [vmem:[#allocation12] ss:$0 sm:$0xff] }
 0x263   : > { %2585 = vmatmul.mubr.f32.gmra.mrb[6].mxu1 %v2176_v20 }
 0x264   : > { %2587 = vmatprep.mubr.f32.mxu1 %v2179_v21 }
 0x265   : > { %2665 = vmatmul.mubr.f32.gmra.mrb[6].mxu0 %v1036_v22 }
 0x266   : > { %2667 = vmatprep.mubr.f32.mxu0 %v1037_v24 }
 0x267   : > { %2588 = vmatmul.mubr.f32.gmra.mrb[8].mxu1 %v2180_v25 }
 0x268   : > { %2590 = vmatprep.mubr.f32.mxu1 %v2183_v26 }
 0x269   : > { %2668 = vmatmul.mubr.f32.gmra.mrb[8].mxu0 %v1038_v27 }
 0x26a   : > { %2670 = vmatprep.mubr.f32.mxu0 %v1039_v29 }
 0x26b   : > { %2591 = vmatmul.mubr.f32.gmra.mrb[10].mxu1 %v2184_v30 }
 0x26c   : > { %2593 = vmatprep.mubr.f32.mxu1 %v2187_v31 }
 0x26d   : > { %2671 = vmatmul.mubr.f32.gmra.mrb[10].mxu0 %v1040_v32 }
 0x26e   : > { %2673 = vmatprep.mubr.f32.mxu0 %v1041_v34 }
 0x26f   : > { %2594 = vmatmul.mubr.f32.gmra.mrb[12].mxu1 %v2188_v35 }
 0x270   : > { %2596 = vmatprep.mubr.f32.mxu1 %v2191_v36 }
 0x271   : > { %2674 = vmatmul.mubr.f32.gmra.mrb[12].mxu0 %v1042_v37 }
 0x272   : > { %2676 = vmatprep.mubr.f32.mxu0 %v1043_v39 }
 0x273   : > { %2597 = vmatmul.mubr.f32.gmra.mrb[14].mxu1 %v2192_v40 }
 0x274   : > { %2599 = vmatprep.mubr.f32.mxu1 %v2195_v41 }
 0x275   : > { %2677 = vmatmul.mubr.f32.gmra.mrb[14].mxu0 %v1044_v42 }
 0x276   : > { %2679 = vmatprep.mubr.f32.mxu0 %v1045_v44 }
 0x277   : > { %2600 = vmatmul.mubr.f32.gmra.mrb[16].mxu1 %v2196_v45 }
 0x278   : > { %2602 = vmatprep.mubr.f32.mxu1 %v2199_v46 }
 0x279   : > { %2680 = vmatmul.mubr.f32.gmra.mrb[16].mxu0 %v1046_v47 }
 0x27a   : > { %2682 = vmatprep.mubr.f32.mxu0 %v1047_v49 }
 0x27b   : > { %2603 = vmatmul.mubr.f32.gmra.mrb[18].mxu1 %v2200_v50 }
 0x27c   : > { %2605 = vmatprep.mubr.f32.mxu1 %v2203_v51 }
 0x27d   : > { %2683 = vmatmul.mubr.f32.gmra.mrb[18].mxu0 %v1048_v52 }
 0x27e   : > { %2685 = vmatprep.mubr.f32.mxu0 %v1049_v54 }
 0x27f   : > { %2606 = vmatmul.mubr.f32.gmra.mrb[20].mxu1 %v2204_v55 }
 0x280   : > { %2608 = vmatprep.mubr.f32.mxu1 %v2207_v56 }
 0x281   : > { %2686 = vmatmul.mubr.f32.gmra.mrb[20].mxu0 %v1050_v57 }
 0x282   : > { %2688 = vmatprep.mubr.f32.mxu0 %v1051_v59 }
 0x283   : > { %2609 = vmatmul.mubr.f32.gmra.mrb[22].mxu1 %v2208_v60 }
 0x284   : > { %2611 = vmatprep.mubr.f32.mxu1 %v2211_v61 }
 0x285   : > { %2689 = vmatmul.mubr.f32.gmra.mrb[22].mxu0 %v1052_v62 }
 0x286   : > { %2691 = vmatprep.mubr.f32.mxu0 %v1053_v0 }
 0x287   : > { %2612 = vmatmul.mubr.f32.gmra.mrb[24].mxu1 %v2212_v1 }
 0x288   : > { %2614 = vmatprep.mubr.f32.mxu1 %v2215_v2 }
 0x289   : > { %2692 = vmatmul.mubr.f32.gmra.mrb[24].mxu0 %v1054_v3 }
 0x28a   : > { %2694 = vmatprep.mubr.f32.mxu0 %v1055_v5 }
 0x28b   : > { %2615 = vmatmul.mubr.f32.gmra.mrb[26].mxu1 %v2216_v6 }
 0x28c   : > { %2617 = vmatprep.mubr.f32.mxu1 %v2219_v7 }
 0x28d   : > { %2695 = vmatmul.mubr.f32.gmra.mrb[26].mxu0 %v1056_v8 }
 0x28e   : > { %2697 = vmatprep.mubr.f32.mxu0 %v1057_v10 }
 0x28f   : > { %2618 = vmatmul.mubr.f32.gmra.mrb[28].mxu1 %v2220_v11 }
 0x290   : > { %2620 = vmatprep.mubr.f32.mxu1 %v2223_v12 }
 0x291   : > { %2698 = vmatmul.mubr.f32.gmra.mrb[28].mxu0 %v1058_v13 }
 0x292   : > { %2700 = vmatprep.mubr.f32.mxu0 %v1059_v14 }
 0x293   : > { %2621 = vmatmul.mubr.f32.gmra.mrb[30].mxu1 %v2224_v15 }
 0x295   : > { %2701 = vmatmul.mubr.f32.gmra.mrb[30].mxu0 %v1060_v16 }
 0x32a   : > { %v2577_v17 = vpop.f32.mrb[0].mxu1 }
 0x32b   : > { %v1223_v20 = vpop.f32.mrb[1].mxu1 }
 0x32c   : > { %v2657_v18 = vpop.f32.mrb[0].mxu0 }
 0x32d   : > { %v1454_v21 = vadd.f32 %v2657_v18, %v2577_v17  ;;  %v1448_v22 = vpop.f32.mrb[1].mxu0 }
 0x32e   : > { %v1449_v23 = vadd.f32 %v1448_v22, %v1223_v20  ;;  %v2580_v25 = vpop.f32.mrb[2].mxu1 }
 0x32f   : > { %v1615_v24 = vadd.f32 %v3946_v19, %v1454_v21  ;;  %v1233_v28 = vpop.f32.mrb[3].mxu1 }
 0x330   : > { %v1614_v26 = vadd.f32 %v3946_v19, %v1449_v23  ;;  %v2660_v27 = vpop.f32.mrb[2].mxu0 }
 0x331   : > { %v1647_v29 = vmax.f32 %v1615_v24, 0.0  ;;  %v1464_v30 = vadd.f32 %v2660_v27, %v2580_v25  ;;  %v1458_v31 = vpop.f32.mrb[3].mxu0 }
 0x332   : > { %v1646_v32 = vmax.f32 %v1614_v26, 0.0  ;;  %v1459_v33 = vadd.f32 %v1458_v31, %v1233_v28  ;;  %v2583_v35 = vpop.f32.mrb[4].mxu1 }
 0x333   : > { %v1617_v34 = vadd.f32 %v3946_v19, %v1464_v30  ;;  %v1243_v39 = vpop.f32.mrb[5].mxu1 }
 0x334   : > { %v2228_v36 = vpack.c.bf16 %v1647_v29, %v1646_v32  ;;  %v1616_v37 = vadd.f32 %v3946_v19, %v1459_v33  ;;  %v2663_v38 = vpop.f32.mrb[4].mxu0 }
 0x335   : > { %v1649_v40 = vmax.f32 %v1617_v34, 0.0  ;;  %v1474_v41 = vadd.f32 %v2663_v38, %v2583_v35  ;;  %v1468_v42 = vpop.f32.mrb[5].mxu0 }
 0x336   : > { %2229 = vst [vmem:[%s3878_s25] sm:$0xff] %v2228_v36   ;;  %v1648_v43 = vmax.f32 %v1616_v37, 0.0  ;;  %v1469_v44 = vadd.f32 %v1468_v42, %v1243_v39  ;;  %v2586_v46 = vpop.f32.mrb[6].mxu1 }
 0x337   : > { %v1619_v45 = vadd.f32 %v3946_v19, %v1474_v41  ;;  %v1253_v50 = vpop.f32.mrb[7].mxu1 }
 0x338   : > { %v2233_v47 = vpack.c.bf16 %v1649_v40, %v1648_v43  ;;  %v1618_v48 = vadd.f32 %v3946_v19, %v1469_v44  ;;  %v2666_v49 = vpop.f32.mrb[6].mxu0 }
 0x339   : > { %v1651_v51 = vmax.f32 %v1619_v45, 0.0  ;;  %v1484_v52 = vadd.f32 %v2666_v49, %v2586_v46  ;;  %v1478_v53 = vpop.f32.mrb[7].mxu0 }
 0x33a   : > { %2320 = vst [vmem:[%s3878_s25 + $0x8] sm:$0xff] %v2233_v47   ;;  %v1650_v54 = vmax.f32 %v1618_v48, 0.0  ;;  %v1479_v55 = vadd.f32 %v1478_v53, %v1253_v50  ;;  %v2589_v57 = vpop.f32.mrb[8].mxu1 }
 0x33b   : > { %v1621_v56 = vadd.f32 %v3946_v19, %v1484_v52  ;;  %v1263_v61 = vpop.f32.mrb[9].mxu1 }
 0x33c   : > { %v2238_v58 = vpack.c.bf16 %v1651_v51, %v1650_v54  ;;  %v1620_v59 = vadd.f32 %v3946_v19, %v1479_v55  ;;  %v2669_v60 = vpop.f32.mrb[8].mxu0 }
 0x33d   : > { %v1653_v62 = vmax.f32 %v1621_v56, 0.0  ;;  %v1494_v63 = vadd.f32 %v2669_v60, %v2589_v57  ;;  %v1488_v0 = vpop.f32.mrb[9].mxu0 }
 0x33e   : > { %2321 = vst [vmem:[%s3878_s25 + $0x10] sm:$0xff] %v2238_v58   ;;  %v1652_v1 = vmax.f32 %v1620_v59, 0.0  ;;  %v1489_v2 = vadd.f32 %v1488_v0, %v1263_v61  ;;  %v2592_v4 = vpop.f32.mrb[10].mxu1 }
 0x33f   : > { %v1623_v3 = vadd.f32 %v3946_v19, %v1494_v63  ;;  %v1273_v8 = vpop.f32.mrb[11].mxu1 }
 0x340   : > { %v2243_v5 = vpack.c.bf16 %v1653_v62, %v1652_v1  ;;  %v1622_v6 = vadd.f32 %v3946_v19, %v1489_v2  ;;  %v2672_v7 = vpop.f32.mrb[10].mxu0 }
 0x341   : > { %v1655_v9 = vmax.f32 %v1623_v3, 0.0  ;;  %v1504_v10 = vadd.f32 %v2672_v7, %v2592_v4  ;;  %v1498_v11 = vpop.f32.mrb[11].mxu0 }
 0x342   : > { %2322 = vst [vmem:[%s3878_s25 + $0x18] sm:$0xff] %v2243_v5   ;;  %v1654_v12 = vmax.f32 %v1622_v6, 0.0  ;;  %v1499_v13 = vadd.f32 %v1498_v11, %v1273_v8  ;;  %v2595_v15 = vpop.f32.mrb[12].mxu1 }
 0x343   : > { %v1625_v14 = vadd.f32 %v3946_v19, %v1504_v10  ;;  %v1283_v20 = vpop.f32.mrb[13].mxu1 }
 0x344   : > { %v2248_v16 = vpack.c.bf16 %v1655_v9, %v1654_v12  ;;  %v1624_v17 = vadd.f32 %v3946_v19, %v1499_v13  ;;  %v2675_v18 = vpop.f32.mrb[12].mxu0 }
 0x345   : > { %v1657_v21 = vmax.f32 %v1625_v14, 0.0  ;;  %v1514_v22 = vadd.f32 %v2675_v18, %v2595_v15  ;;  %v1508_v23 = vpop.f32.mrb[13].mxu0 }
 0x346   : > { %2323 = vst [vmem:[%s3878_s25 + $0x20] sm:$0xff] %v2248_v16   ;;  %v1656_v24 = vmax.f32 %v1624_v17, 0.0  ;;  %v1509_v25 = vadd.f32 %v1508_v23, %v1283_v20  ;;  %v2598_v27 = vpop.f32.mrb[14].mxu1 }
 0x347   : > { %v1627_v26 = vadd.f32 %v3946_v19, %v1514_v22  ;;  %v1293_v31 = vpop.f32.mrb[15].mxu1 }
 0x348   : > { %v2253_v28 = vpack.c.bf16 %v1657_v21, %v1656_v24  ;;  %v1626_v29 = vadd.f32 %v3946_v19, %v1509_v25  ;;  %v2678_v30 = vpop.f32.mrb[14].mxu0 }
 0x349   : > { %v1659_v32 = vmax.f32 %v1627_v26, 0.0  ;;  %v1524_v33 = vadd.f32 %v2678_v30, %v2598_v27  ;;  %v1518_v34 = vpop.f32.mrb[15].mxu0 }
 0x34a   : > { %2324 = vst [vmem:[%s3878_s25 + $0x28] sm:$0xff] %v2253_v28   ;;  %v1658_v35 = vmax.f32 %v1626_v29, 0.0  ;;  %v1519_v36 = vadd.f32 %v1518_v34, %v1293_v31  ;;  %v2601_v38 = vpop.f32.mrb[16].mxu1 }
 0x34b   : > { %v1629_v37 = vadd.f32 %v3946_v19, %v1524_v33  ;;  %v1303_v42 = vpop.f32.mrb[17].mxu1 }
 0x34c   : > { %v2258_v39 = vpack.c.bf16 %v1659_v32, %v1658_v35  ;;  %v1628_v40 = vadd.f32 %v3946_v19, %v1519_v36  ;;  %v2681_v41 = vpop.f32.mrb[16].mxu0 }
 0x34d   : > { %v1661_v43 = vmax.f32 %v1629_v37, 0.0  ;;  %v1534_v44 = vadd.f32 %v2681_v41, %v2601_v38  ;;  %v1528_v45 = vpop.f32.mrb[17].mxu0 }
 0x34e   : > { %2325 = vst [vmem:[%s3878_s25 + $0x30] sm:$0xff] %v2258_v39   ;;  %v1660_v46 = vmax.f32 %v1628_v40, 0.0  ;;  %v1529_v47 = vadd.f32 %v1528_v45, %v1303_v42  ;;  %v2604_v49 = vpop.f32.mrb[18].mxu1 }
 0x34f   : > { %v1631_v48 = vadd.f32 %v3946_v19, %v1534_v44  ;;  %v1313_v53 = vpop.f32.mrb[19].mxu1 }
 0x350   : > { %v2263_v50 = vpack.c.bf16 %v1661_v43, %v1660_v46  ;;  %v1630_v51 = vadd.f32 %v3946_v19, %v1529_v47  ;;  %v2684_v52 = vpop.f32.mrb[18].mxu0 }
 0x351   : > { %v1663_v54 = vmax.f32 %v1631_v48, 0.0  ;;  %v1544_v55 = vadd.f32 %v2684_v52, %v2604_v49  ;;  %v1538_v56 = vpop.f32.mrb[19].mxu0 }
 0x352   : > { %2326 = vst [vmem:[%s3878_s25 + $0x38] sm:$0xff] %v2263_v50   ;;  %v1662_v57 = vmax.f32 %v1630_v51, 0.0  ;;  %v1539_v58 = vadd.f32 %v1538_v56, %v1313_v53  ;;  %v2607_v60 = vpop.f32.mrb[20].mxu1 }
 0x353   : > { %v1633_v59 = vadd.f32 %v3946_v19, %v1544_v55  ;;  %v1323_v0 = vpop.f32.mrb[21].mxu1 }
 0x354   : > { %v2268_v61 = vpack.c.bf16 %v1663_v54, %v1662_v57  ;;  %v1632_v62 = vadd.f32 %v3946_v19, %v1539_v58  ;;  %v2687_v63 = vpop.f32.mrb[20].mxu0 }
 0x355   : > { %v1665_v1 = vmax.f32 %v1633_v59, 0.0  ;;  %v1554_v2 = vadd.f32 %v2687_v63, %v2607_v60  ;;  %v1548_v3 = vpop.f32.mrb[21].mxu0 }
 0x356   : > { %2327 = vst [vmem:[%s3878_s25 + $0x40] sm:$0xff] %v2268_v61   ;;  %v1664_v4 = vmax.f32 %v1632_v62, 0.0  ;;  %v1549_v5 = vadd.f32 %v1548_v3, %v1323_v0  ;;  %v2610_v7 = vpop.f32.mrb[22].mxu1 }
 0x357   : > { %v1635_v6 = vadd.f32 %v3946_v19, %v1554_v2  ;;  %v1333_v11 = vpop.f32.mrb[23].mxu1 }
 0x358   : > { %v2273_v8 = vpack.c.bf16 %v1665_v1, %v1664_v4  ;;  %v1634_v9 = vadd.f32 %v3946_v19, %v1549_v5  ;;  %v2690_v10 = vpop.f32.mrb[22].mxu0 }
 0x359   : > { %v1667_v12 = vmax.f32 %v1635_v6, 0.0  ;;  %v1564_v13 = vadd.f32 %v2690_v10, %v2610_v7  ;;  %v1558_v14 = vpop.f32.mrb[23].mxu0 }
 0x35a   : > { %2328 = vst [vmem:[%s3878_s25 + $0x48] sm:$0xff] %v2273_v8   ;;  %v1666_v15 = vmax.f32 %v1634_v9, 0.0  ;;  %v1559_v16 = vadd.f32 %v1558_v14, %v1333_v11  ;;  %v2613_v18 = vpop.f32.mrb[24].mxu1 }
 0x35b   : > { %v1637_v17 = vadd.f32 %v3946_v19, %v1564_v13  ;;  %v1343_v23 = vpop.f32.mrb[25].mxu1 }
 0x35c   : > { %v2278_v20 = vpack.c.bf16 %v1667_v12, %v1666_v15  ;;  %v1636_v21 = vadd.f32 %v3946_v19, %v1559_v16  ;;  %v2693_v22 = vpop.f32.mrb[24].mxu0 }
 0x35d   : > { %v1669_v24 = vmax.f32 %v1637_v17, 0.0  ;;  %v1574_v25 = vadd.f32 %v2693_v22, %v2613_v18  ;;  %v1568_v26 = vpop.f32.mrb[25].mxu0 }
 0x35e   : > { %2329 = vst [vmem:[%s3878_s25 + $0x50] sm:$0xff] %v2278_v20   ;;  %v1668_v27 = vmax.f32 %v1636_v21, 0.0  ;;  %v1569_v28 = vadd.f32 %v1568_v26, %v1343_v23  ;;  %v2616_v30 = vpop.f32.mrb[26].mxu1 }
 0x35f   : > { %v1639_v29 = vadd.f32 %v3946_v19, %v1574_v25  ;;  %v1353_v34 = vpop.f32.mrb[27].mxu1 }
 0x360   : > { %v2283_v31 = vpack.c.bf16 %v1669_v24, %v1668_v27  ;;  %v1638_v32 = vadd.f32 %v3946_v19, %v1569_v28  ;;  %v2696_v33 = vpop.f32.mrb[26].mxu0 }
 0x361   : > { %v1671_v35 = vmax.f32 %v1639_v29, 0.0  ;;  %v1584_v36 = vadd.f32 %v2696_v33, %v2616_v30  ;;  %v1578_v37 = vpop.f32.mrb[27].mxu0 }
 0x362   : > { %2330 = vst [vmem:[%s3878_s25 + $0x58] sm:$0xff] %v2283_v31   ;;  %v1670_v38 = vmax.f32 %v1638_v32, 0.0  ;;  %v1579_v39 = vadd.f32 %v1578_v37, %v1353_v34  ;;  %v2619_v41 = vpop.f32.mrb[28].mxu1 }
 0x363   : > { %v1641_v40 = vadd.f32 %v3946_v19, %v1584_v36  ;;  %v1363_v45 = vpop.f32.mrb[29].mxu1 }
 0x364   : > { %v2288_v42 = vpack.c.bf16 %v1671_v35, %v1670_v38  ;;  %v1640_v43 = vadd.f32 %v3946_v19, %v1579_v39  ;;  %v2699_v44 = vpop.f32.mrb[28].mxu0 }
 0x365   : > { %v1673_v46 = vmax.f32 %v1641_v40, 0.0  ;;  %v1594_v47 = vadd.f32 %v2699_v44, %v2619_v41  ;;  %v1588_v48 = vpop.f32.mrb[29].mxu0 }
 0x366   : > { %2331 = vst [vmem:[%s3878_s25 + $0x60] sm:$0xff] %v2288_v42   ;;  %v1672_v49 = vmax.f32 %v1640_v43, 0.0  ;;  %v1589_v50 = vadd.f32 %v1588_v48, %v1363_v45  ;;  %v2622_v52 = vpop.f32.mrb[30].mxu1 }
 0x367   : > { %v1643_v51 = vadd.f32 %v3946_v19, %v1594_v47  ;;  %v1373_v56 = vpop.f32.mrb[31].mxu1 }
 0x368   : > { %v2293_v53 = vpack.c.bf16 %v1673_v46, %v1672_v49  ;;  %v1642_v54 = vadd.f32 %v3946_v19, %v1589_v50  ;;  %v2702_v55 = vpop.f32.mrb[30].mxu0 }
 0x369   : > { %v1675_v57 = vmax.f32 %v1643_v51, 0.0  ;;  %v1604_v58 = vadd.f32 %v2702_v55, %v2622_v52  ;;  %v1598_v59 = vpop.f32.mrb[31].mxu0 }
 0x36a   : > { %2332 = vst [vmem:[%s3878_s25 + $0x68] sm:$0xff] %v2293_v53   ;;  %v1674_v60 = vmax.f32 %v1642_v54, 0.0  ;;  %v1599_v61 = vadd.f32 %v1598_v59, %v1373_v56 }
 0x36b   : > { %v1645_v62 = vadd.f32 %v3946_v19, %v1604_v58 }
 0x36c   : > { %v2298_v63 = vpack.c.bf16 %v1675_v57, %v1674_v60  ;;  %v1644_v0 = vadd.f32 %v3946_v19, %v1599_v61 }
 0x36d   : > { %v1677_v1 = vmax.f32 %v1645_v62, 0.0 }
 0x36e   : > { %2333 = vst [vmem:[%s3878_s25 + $0x70] sm:$0xff] %v2298_v63   ;;  %v1676_v2 = vmax.f32 %v1644_v0, 0.0 }
 0x370   : > { %v2303_v3 = vpack.c.bf16 %v1677_v1, %v1676_v2 }
 0x372   : > { %2334 = vst [vmem:[%s3878_s25 + $0x78] sm:$0xff] %v2303_v3  }
 0x373 PF: > { %s4173_s2 = sld [smem:[#allocation25_spill]]  ;;  %s1852_s14 = sshll.u32 %s3878_s25, 4  ;;  %s4003_s14 = int_to_ptr.vmem [resolvable:$true] %s1852_s14 }
 0x374   : > { %s4174_s30 = sld [smem:[#allocation34_spill]]  ;;  %s4007_s17 = scalar_lea.sflag [#allocation5], %s353_s18 }
 0x375   : > { %s3228_s27 = scalar_lea.vmem %s4003_s14, 2048  ;;  %p4176_p2 = scmp.ne.s32.totalorder %s4152_s3, 0 }
 0x376   : > { %p3229_p4 = scmp.ne.s32.totalorder %s4003_s14, %s3228_s27  ;;  %s3404_s6 = smov [#allocation14]  }
 0x377   : > { %s3232_s7 = sshll.u32 %s3404_s6, 4  ;;  %s3233_s7 = int_to_ptr.vmem [resolvable:$false] %s3232_s7 }
 0x378   : > { %p3230_p0 = pnand %p3229_p4, %p4176_p2  ;;  %s3234_s20 = scalar_lea.vmem %s3233_s7, 4096 }
 0x379   : > { %s2160_s26 = sshll.u32 %s4173_s2, 11  ;;  %p3235_p9 = scmp.lt.s32.totalorder %s4003_s14, %s3233_s7 }
 0x37a   : > { %s4175_s13 = smov %s4174_s30  ;;  %s4000_s19 = scalar_lea.hbm %s4174_s30, %s2160_s26 }
 0x37b   : > { %p3231_p5 = pneg %p3230_p0  ;;  %p3236_p13 = scmp.lt.s32.totalorder %s3234_s20, %s3228_s27 }
 0x37d   : > { %p3237_p12 = por %p3236_p13, %p3235_p9 }
 0x37f   : > { %p3238_p1 = pnand %p3237_p12, %p3231_p5 }
 0x381   : > { %3241 = shalt.err (!%p3238_p1)
}
 0x382   : > { %s3242_s18 = scalar_lea.hbm %s4000_s19, 2048  ;;  %s3246_s2 = scalar_lea.hbm %s4175_s13, 4096 }
 0x383   : > { %p3243_p10 = scmp.ne.s32.totalorder %s4000_s19, %s3242_s18  ;;  %p3247_p3 = scmp.lt.u32.totalorder %s4000_s19, %s4175_s13 }
 0x384   : > { %p3248_p11 = scmp.lt.u32.totalorder %s3246_s2, %s3242_s18  ;;  %p3250_p4 = scmp.lt.u32.totalorder %s3242_s18, %s4000_s19 }
 0x385   : > { %p3244_p6 = pnand %p3243_p10, %p4176_p2 }
 0x386   : > { %p3249_p8 = por %p3248_p11, %p3247_p3 }
 0x387   : > { %p3245_p7 = pneg %p3244_p6 }
 0x388   : > { %p3251_p0 = por %p3250_p4, %p3249_p8 }
 0x38a   : > { %p3252_p5 = pnand %p3251_p0, %p3245_p7 }
 0x38c   : > { %3255 = shalt.err (!%p3252_p5)
}
 0x38d   : > { %s3405_s16 = smov 64   ;;  %s3406_s30 = smov 4  }
 0x38e   : > { %2833 = dma.vmem_to_hbm [thread:$0]  (%p4176_p2), %s4003_s14, 2048, %s4000_s19, %s4007_s17, %s3405_s16, %s3405_s16, %s3406_s30  }
 0x38f PF: > { %s4177_s27 = sld [smem:[#allocation21_spill]]  ;;  %p2866_p9 = scmp.ge.s32.totalorder %s3390_s10, 2 }
 0x390   : > { %p4178_p13 = scmp.ne.s32.totalorder %s4155_s21, 0 }
 0x392   : > { %p2856_p12 = pnand %p2866_p9, %p4178_p13 }
 0x395   : > { %s1867_s6 = sand.u32 1, %s4177_s27  }
 0x396   : > { %s1868_s7 = scalar_lea.sflag [#allocation5], %s1867_s6 }
 0x397   : > { %3333 = dma.done.wait (!%p2856_p12), %s1868_s7, 2048  }
 0x398   : > { %3335 = vsyncadd (!%p2856_p12), %s1868_s7, 4294965248  ;;  %s27_s10 = sadd.s32 1, %s3390_s10   ;;  %s4180_s3 = sld [smem:[#allocation22_spill]] }
 0x399   : > { %p4036_p1 = scmp.ge.s32.totalorder %s27_s10, 6   ;;  %s4181_s25 = sld [smem:[#allocation23_spill]] }
 0x39a   : > { %s4182_s26 = sld [smem:[#allocation29_spill]]  ;;  %s4183_s19 = sld [smem:[#allocation27_spill]] }
 0x39b   : > { %s4184_s14 = sld [smem:[#allocation28_spill]]  ;;  %s4185_s21 = smov %s3342_s22 }
 0x39c   : > { %s4186_s22 = smov %s3346_s23  ;;  %s4187_s23 = smov %s3772_s24 }
 0x39d   : > { %s4189_s27 = smov %s3366_s28  ;;  %s4190_s28 = smov %s3370_s29 }
 0x39e   : > { %s4188_s24 = smov %s4180_s3  ;;  %s4191_s29 = smov %s3701_s15 }
 0x39f   : > { %s4192_s30 = smov %s3382_s8  ;;  %s4193_s7 = smov %s3386_s9 }
 0x3a0   : > { %s4194_s8 = smov %s4183_s19  ;;  %26 = sbr.rel (!%p4036_p1) target bundleno = 19 (0x13), region = 133 }
 0x3a1   : > { %s4195_s9 = smov %s4184_s14 }
 0x3a7   :  { %1873 = vsyncpa [#allocation4], 1 }
 0x3a8   :  { %1875 = vsyncpa [#allocation4 + $0x1], 1 }
 0x3a9   :  { %1876 = vsyncpa [#allocation7], 1 }
 0x3aa   :  { %1878 = vsyncpa [#allocation7 + $0x1], 1 }
 0x3ab   :  { %1879 = vsyncpa [#allocation10], 1 }
 0x3ac   :  { %1880 = vsyncpa [#allocation13], 1 }
 0x3ad   :  { %1881 = vsyncpa [#allocation5], 1 }
 0x3ae   :  { %1883 = vsyncpa [#allocation5 + $0x1], 1 }

</bundles_post_ra>
